<compile_context>
chip_gen: v5e
topology: v5e:2x2
jax: 0.10.0
libtpu: 0.0.40
codegen_flags: <defaults>
</compile_context>

<pallas_src>
import jax
import jax.numpy as jnp
from jax.experimental import pallas as pl
from jax.experimental.pallas import tpu as pltpu

INPUT_SIZE = 784      # multiple of 16 -> legal bf16 sublane tiling, no padding needed
HIDDEN_SIZE = 500
NUM_CLASSES = 10

HIDDEN_PAD = 512      # 500 -> 512 (lane multiple)
CLASS_PAD = 128       # 10  -> 128 (lane-dense output stores)


def mlp_kernel(x_ref, w1_ref, b1_ref, w2_ref, b2_ref, o_ref):
    # x arrives as raw f32; cast on the VPU right before the MXU op, so HBM
    # only ever carries the original (un-padded, un-cast) activations.
    x = x_ref[...].astype(jnp.bfloat16)
    # Layer 1: (TB, 784)bf16 @ (784, 512)bf16 -> f32 accumulate on the MXU.
    h = jnp.dot(x, w1_ref[...], preferred_element_type=jnp.float32)
    h = jnp.maximum(h + b1_ref[...], 0.0)                 # bias + ReLU in f32 (VPU)
    # Layer 2: (TB, 512)bf16 @ (512, 128)bf16 -> f32 accumulate.
    out = jnp.dot(h.astype(jnp.bfloat16), w2_ref[...],
                  preferred_element_type=jnp.float32)
    o_ref[...] = (out + b2_ref[...]).astype(o_ref.dtype)  # lane-dense 128-wide store


def prepare_params(w1, b1, w2, b2):
    """One-time parameter prep: transpose to (in, out), zero-pad out-features
    to lane multiples (784 input dim is kept as-is), cast matmul operands to
    bf16.  Do this at init, not per step."""
    w1_t = jnp.zeros((INPUT_SIZE, HIDDEN_PAD), jnp.float32)
    w1_t = w1_t.at[:, :HIDDEN_SIZE].set(jnp.transpose(w1))
    w2_t = jnp.zeros((HIDDEN_PAD, CLASS_PAD), jnp.float32)
    w2_t = w2_t.at[:HIDDEN_SIZE, :NUM_CLASSES].set(jnp.transpose(w2))
    b1_p = jnp.zeros((1, HIDDEN_PAD), jnp.float32).at[0, :HIDDEN_SIZE].set(b1)
    b2_p = jnp.zeros((1, CLASS_PAD), jnp.float32).at[0, :NUM_CLASSES].set(b2)
    return w1_t.astype(jnp.bfloat16), b1_p, w2_t.astype(jnp.bfloat16), b2_p


def _batch_tile(b):
    """Batch tile: large tiles (up to 512 rows) for big batches; for smaller
    batches split into two balanced tiles so a 2-TC chip (v7x megacore) gets
    work on both cores.  Multiple of 8 (f32 sublane)."""
    cap = 512
    if b >= 2 * cap:
        return cap
    half = -(-b // 2)                       # ceil(b/2)
    return max(8, -(-half // 8) * 8)        # round up to a multiple of 8


def neural_net_forward(x, w1_p, b1_p, w2_p, b2_p):
    """x: (B, 784) float32; (w1_p, b1_p, w2_p, b2_p) from prepare_params."""
    B = x.shape[0]
    TB = _batch_tile(B)
    grid = (pl.cdiv(B, TB),)                # partial last block -> masked stores

    resident = lambda shape: pl.BlockSpec(shape, lambda i: (0, 0))

    flops = 2 * B * (INPUT_SIZE * HIDDEN_PAD + HIDDEN_PAD * CLASS_PAD)
    bytes_accessed = (B * INPUT_SIZE * 4            # raw f32 x
                      + w1_p.size * 2 + w2_p.size * 2
                      + b1_p.size * 4 + b2_p.size * 4
                      + B * CLASS_PAD * 4)          # 128-wide f32 logits

    out = pl.pallas_call(
        mlp_kernel,
        out_shape=jax.ShapeDtypeStruct((B, CLASS_PAD), jnp.float32),
        grid=grid,
        in_specs=[
            pl.BlockSpec((TB, INPUT_SIZE), lambda i: (i, 0)),   # x: batch-tiled raw f32
            resident((INPUT_SIZE, HIDDEN_PAD)),                 # w1: resident bf16
            resident((1, HIDDEN_PAD)),                          # b1: f32
            resident((HIDDEN_PAD, CLASS_PAD)),                  # w2: resident bf16
            resident((1, CLASS_PAD)),                           # b2: f32
        ],
        out_specs=pl.BlockSpec((TB, CLASS_PAD), lambda i: (i, 0)),
        compiler_params=pltpu.CompilerParams(
            dimension_semantics=("parallel",),      # v7x megacore batch sharding
            vmem_limit_bytes=32 << 20,
        ),
        cost_estimate=pl.CostEstimate(
            flops=flops, transcendentals=0, bytes_accessed=bytes_accessed),
    )(x, w1_p, b1_p, w2_p, b2_p)
    return out[:, :NUM_CLASSES]


def init_params(key):
    """Deterministic init mirroring nn.Linear shapes (Kaiming-uniform-like)."""
    k1, k2, k3, k4 = jax.random.split(key, 4)
    bound1 = 1.0 / (INPUT_SIZE ** 0.5)
    bound2 = 1.0 / (HIDDEN_SIZE ** 0.5)
    w1 = jax.random.uniform(k1, (HIDDEN_SIZE, INPUT_SIZE), jnp.float32, -bound1, bound1)
    b1 = jax.random.uniform(k2, (HIDDEN_SIZE,), jnp.float32, -bound1, bound1)
    w2 = jax.random.uniform(k3, (NUM_CLASSES, HIDDEN_SIZE), jnp.float32, -bound2, bound2)
    b2 = jax.random.uniform(k4, (NUM_CLASSES,), jnp.float32, -bound2, bound2)
    return w1, b1, w2, b2


if __name__ == "__main__":
    key = jax.random.PRNGKey(0)
    kx, kp = jax.random.split(key)
    batch = 20   # small; exercises a 2-step grid with a partial (masked) last block
    x = jax.random.normal(kx, (batch, INPUT_SIZE), jnp.float32)
    w1, b1, w2, b2 = init_params(kp)
    params = prepare_params(w1, b1, w2, b2)

    out = jax.block_until_ready(neural_net_forward(x, *params))
    assert out.shape == (batch, NUM_CLASSES)

    # Reference 1: same bf16-quantized operands, f32 accumulation (kernel math).
    xq = x.astype(jnp.bfloat16).astype(jnp.float32)
    w1q = w1.astype(jnp.bfloat16).astype(jnp.float32)
    w2q = w2.astype(jnp.bfloat16).astype(jnp.float32)
    hq = jnp.maximum(xq @ w1q.T + b1, 0.0)
    refq = hq.astype(jnp.bfloat16).astype(jnp.float32) @ w2q.T + b2
    assert jnp.allclose(out, refq, atol=2e-3, rtol=2e-3)

    # Reference 2: full-f32 forward identical to the PyTorch module (loose tol
    # to allow for the bf16 operand quantization).
    ref = jnp.maximum(x @ w1.T + b1, 0.0) @ w2.T + b2
    assert jnp.allclose(out, ref, atol=5e-2, rtol=5e-2)

    print("KERNEL_OK")
</pallas_src>

<mosaic_0001>
module attributes {stable_mosaic.version = 11 : i64} {
  func.func @mlp_kernel(%arg0: i32, %arg1: memref<16x784xf32, #tpu.memory_space<vmem>>, %arg2: memref<784x512xbf16, #tpu.memory_space<vmem>>, %arg3: memref<1x512xf32, #tpu.memory_space<vmem>>, %arg4: memref<512x128xbf16, #tpu.memory_space<vmem>>, %arg5: memref<1x128xf32, #tpu.memory_space<vmem>>, %arg6: memref<16x128xf32, #tpu.memory_space<vmem>>) attributes {dimension_semantics = [#tpu.dimension_semantics<parallel>], iteration_bounds = array<i64: 2>, scalar_prefetch = 0 : i64, scratch_operands = 0 : i64, tpu.core_type = #tpu.core_type<tc>, window_params = [{transform_indices = @transform_0, window_bounds = array<i64: 16, 784>}, {pipeline_mode = #tpu.pipeline_mode<synchronous>, transform_indices = @transform_1, window_bounds = array<i64: 784, 512>}, {pipeline_mode = #tpu.pipeline_mode<synchronous>, transform_indices = @transform_2, window_bounds = array<i64: 1, 512>}, {pipeline_mode = #tpu.pipeline_mode<synchronous>, transform_indices = @transform_3, window_bounds = array<i64: 512, 128>}, {pipeline_mode = #tpu.pipeline_mode<synchronous>, transform_indices = @transform_4, window_bounds = array<i64: 1, 128>}, {transform_indices = @transform_5, window_bounds = array<i64: 16, 128>}]} {
    %c0 = arith.constant 0 : index
    %c0_0 = arith.constant 0 : index
    %0 = vector.load %arg1[%c0, %c0_0] : memref<16x784xf32, #tpu.memory_space<vmem>>, vector<16x784xf32>
    %1 = arith.truncf %0 : vector<16x784xf32> to vector<16x784xbf16>
    %c0_1 = arith.constant 0 : index
    %c0_2 = arith.constant 0 : index
    %2 = vector.load %arg2[%c0_1, %c0_2] : memref<784x512xbf16, #tpu.memory_space<vmem>>, vector<784x512xbf16>
    %cst = arith.constant dense<0.000000e+00> : vector<16x512xf32>
    %3 = tpu.matmul %1, %2, %cst {dimension_numbers = #tpu.dot_dimension_numbers<[1], [0], [0], [1], [0, 0, 1, 1], [], []>} : vector<16x784xbf16>, vector<784x512xbf16>, vector<16x512xf32> -> vector<16x512xf32>
    %c0_3 = arith.constant 0 : index
    %c0_4 = arith.constant 0 : index
    %4 = vector.load %arg3[%c0_3, %c0_4] : memref<1x512xf32, #tpu.memory_space<vmem>>, vector<1x512xf32>
    %5 = vector.broadcast %4 : vector<1x512xf32> to vector<16x512xf32>
    %6 = arith.addf %3, %5 : vector<16x512xf32>
    %cst_5 = arith.constant 0.000000e+00 : f32
    %7 = vector.broadcast %cst_5 : f32 to vector<16x512xf32>
    %8 = arith.maximumf %6, %7 : vector<16x512xf32>
    %9 = arith.truncf %8 : vector<16x512xf32> to vector<16x512xbf16>
    %c0_6 = arith.constant 0 : index
    %c0_7 = arith.constant 0 : index
    %10 = vector.load %arg4[%c0_6, %c0_7] : memref<512x128xbf16, #tpu.memory_space<vmem>>, vector<512x128xbf16>
    %cst_8 = arith.constant dense<0.000000e+00> : vector<16x128xf32>
    %11 = tpu.matmul %9, %10, %cst_8 {dimension_numbers = #tpu.dot_dimension_numbers<[1], [0], [0], [1], [0, 0, 1, 1], [], []>} : vector<16x512xbf16>, vector<512x128xbf16>, vector<16x128xf32> -> vector<16x128xf32>
    %c0_9 = arith.constant 0 : index
    %c0_10 = arith.constant 0 : index
    %12 = vector.load %arg5[%c0_9, %c0_10] : memref<1x128xf32, #tpu.memory_space<vmem>>, vector<1x128xf32>
    %13 = vector.broadcast %12 : vector<1x128xf32> to vector<16x128xf32>
    %14 = arith.addf %11, %13 : vector<16x128xf32>
    %c0_11 = arith.constant 0 : index
    %c0_12 = arith.constant 0 : index
    %15 = vector.load %arg6[%c0_11, %c0_12] : memref<16x128xf32, #tpu.memory_space<vmem>>, vector<16x128xf32>
    tpu.vector_store %arg6[%c0_11, %c0_12], %14 {strides = array<i32>} : memref<16x128xf32, #tpu.memory_space<vmem>>, vector<16x128xf32>,
    return
  }
  func.func @transform_0(%arg0: i32) -> (i32, i32) {
    %c0_i32 = arith.constant 0 : i32
    %c0_i32_0 = arith.constant 0 : i32
    return %arg0, %c0_i32 : i32, i32
  }
  func.func @transform_1(%arg0: i32) -> (i32, i32) {
    %c0_i32 = arith.constant 0 : i32
    %c0_i32_0 = arith.constant 0 : i32
    %c0_i32_1 = arith.constant 0 : i32
    return %c0_i32, %c0_i32_0 : i32, i32
  }
  func.func @transform_2(%arg0: i32) -> (i32, i32) {
    %c0_i32 = arith.constant 0 : i32
    %c0_i32_0 = arith.constant 0 : i32
    %c0_i32_1 = arith.constant 0 : i32
    return %c0_i32, %c0_i32_0 : i32, i32
  }
  func.func @transform_3(%arg0: i32) -> (i32, i32) {
    %c0_i32 = arith.constant 0 : i32
    %c0_i32_0 = arith.constant 0 : i32
    %c0_i32_1 = arith.constant 0 : i32
    return %c0_i32, %c0_i32_0 : i32, i32
  }
  func.func @transform_4(%arg0: i32) -> (i32, i32) {
    %c0_i32 = arith.constant 0 : i32
    %c0_i32_0 = arith.constant 0 : i32
    %c0_i32_1 = arith.constant 0 : i32
    return %c0_i32, %c0_i32_0 : i32, i32
  }
  func.func @transform_5(%arg0: i32) -> (i32, i32) {
    %c0_i32 = arith.constant 0 : i32
    %c0_i32_0 = arith.constant 0 : i32
    return %arg0, %c0_i32 : i32, i32
  }
}

</mosaic_0001>

<bundles_post_ra>
// kernel: tpu_custom_call.1
= control target key start
LH: loop header
LB: loop body
LE: loop exit
PB: predicated region body
PF: predicated region fallthrough
CT: control target
= control target key end

     0   :  { %s4172_s0 = inlined_call_operand.hbm [shape: f32[20,784], index: 0, kind: input, shape index: {}]   ;;  %s4173_s1 = inlined_call_operand.hbm [shape: bf16[784,512], index: 1, kind: input, shape index: {}]   ;;  %s4174_s2 = inlined_call_operand.hbm [shape: f32[1,512], index: 2, kind: input, shape index: {}]   ;;  %s4175_s3 = inlined_call_operand.hbm [shape: bf16[512,128], index: 3, kind: input, shape index: {}]   ;;  %s4176_s4 = inlined_call_operand.vmem [shape: f32[1,128], index: 4, kind: input, shape index: {}]   ;;  %s4177_s5 = inlined_call_operand.hbm [shape: f32[20,128], index: 5, kind: output, shape index: {}]  }
   0x1   :  { %4180 = sst [smem:[#allocation15_spill]] %s4173_s1 }
   0x2   :  { %4181 = sst [smem:[#allocation16_spill]] %s4174_s2 }
   0x3   :  { %10 = vsyncpa [#allocation3], 0 }
   0x4   :  { %12 = vsyncpa [#allocation3 + $0x1], 0 }
   0x5   :  { %13 = vsyncpa [#allocation6], 0 }
   0x6   :  { %14 = vsyncpa [#allocation9], 0 }
   0x7   :  { %15 = vsyncpa [#allocation4], 0 }
   0x8   :  { %17 = vsyncpa [#allocation4 + $0x1], 0  ;;  %s3885_s18 = smov 0   ;;  %s3887_s19 = smov 0  }
   0x9   :  { %s3889_s20 = smov 0   ;;  %s3891_s21 = smov 0  }
   0xa LB: > { %s3906_s22 = sadd.s32 4294967295, %s3840_s21   ;;  %s2372_s23 = sadd.s32 4294967294, %s3840_s21   ;;  %s3840_s21 = sphi %s3891_s21, %s4201_s21   ;;  %s3836_s20 = sphi %s3889_s20, %s4200_s20   ;;  %s3832_s19 = sphi %s3887_s19, %s4199_s19   ;;  %s3828_s18 = sphi %s3885_s18, %s4198_s18  }
   0xb   : > { %s3910_s24 = sadd.s32 1, %s3840_s21   ;;  %s30_s25 = sadd.s32 1, %s3836_s20 }
   0xc   : > { %s27_s26 = ssub.s32 %s3840_s21, %s3910_s24  ;;  %p37_p0 = scmp.ne.s32.totalorder %s3836_s20, %s3832_s19 }
   0xd   : > { %p28_p1 = scmp.eq.s32.totalorder %s27_s26, 0  ;;  %p38_p2 = scmp.eq.s32.totalorder %s3840_s21, 0 }
   0xe   : > { %p43_p3 = scmp.ne.s32.totalorder %s3832_s19, %s3828_s18  ;;  %p4179_p4 = scmp.eq.s32.totalorder %s3906_s22, 0 }
   0xf   : > { %s3922_s27 = scalar_select %p28_p1, %s3836_s20, %s30_s25  }
  0x10   : > { %p3924_p5 = por %p38_p2, %p37_p0  ;;  %p3930_p6 = por %p4179_p4, %p43_p3 }
  0x11   : > { %p151_p7 = scmp.eq.s32.totalorder %s3906_s22, 1  ;;  %p157_p8 = scmp.eq.s32.totalorder %s2372_s23, 1 }
  0x12   : > { %p2373_p9 = scmp.ge.s32.totalorder %s3840_s21, 1  ;;  %p164_p10 = scmp.lt.s32.totalorder %s3840_s21, 3 }
  0x13   : > { %p3937_p11 = por %p151_p7, %p37_p0  ;;  %p3941_p12 = por %p157_p8, %p43_p3 }
  0x14   : > { %p3945_p13 = pnand %p2373_p9, %p164_p10  ;;  %s4187_s1 = sld [smem:[#allocation15_spill]] }
  0x15   : > { %s4185_s6 = scalar_select %p3941_p12, 1, 0 }
  0x16   : > { %p3561_p1 = pneg %p3945_p13  ;;  %s3842_s11 = smov [#allocation5]  }
  0x17   : > { %s177_s12 = sshll.u32 %s3842_s11, 4  ;;  %s4189_s2 = sld [smem:[#allocation16_spill]]  ;;  %s178_s12 = int_to_ptr.vmem [resolvable:$true] %s177_s12 }
  0x18   : > { %p3956_p0 = pnand %p3561_p1, %p4179_p4  ;;  %s3843_s17 = smov 256  }
  0x19   : > { %s3844_s23 = smov 16   ;;  %s201_s8 = sshll.u32 %s4175_s3, 4  ;;  %s202_s8 = int_to_ptr.hbm [resolvable:$true] %s201_s8 }
  0x1a   : > { %s175_s10 = sshll.u32 %s4187_s1, 4  ;;  %s3845_s9 = smov [#allocation7]   ;;  %s176_s10 = int_to_ptr.hbm [resolvable:$true] %s175_s10 }
  0x1b   : > { %3564 = dma.hbm_to_vmem [thread:$0]  (!%p3956_p0), %s176_s10, 25088, %s178_s12, [#allocation6], %s3843_s17, %s3843_s17, %s3844_s23  }
  0x1c   : > { %s192_s11 = sshll.u32 %s3845_s9, 4  ;;  %s3846_s14 = smov [#allocation8]   ;;  %s193_s11 = int_to_ptr.vmem [resolvable:$true] %s192_s11 }
  0x1d   : > { %s190_s16 = sshll.u32 %s4189_s2, 4  ;;  %s203_s15 = sshll.u32 %s3846_s14, 4  ;;  %s191_s16 = int_to_ptr.hbm [resolvable:$true] %s190_s16  ;;  %s204_s15 = int_to_ptr.vmem [resolvable:$true] %s203_s15 }
  0x1e   : > { %3567 = dma.hbm_to_vmem [thread:$0]  (!%p3956_p0), %s191_s16, 64, %s193_s11, [#allocation6]  }
  0x1f   : > { %s3847_s1 = smov 64   ;;  %s3848_s2 = smov 4  }
  0x20   : > { %3570 = dma.hbm_to_vmem [thread:$0]  (!%p3956_p0), %s202_s8, 4096, %s204_s15, [#allocation9], %s3847_s1, %s3847_s1, %s3848_s2  }
  0x21   : > { %p4178_p2 = scmp.ge.s32.totalorder %s3840_s21, 2 }
  0x23   : > { %216 = sbr.rel (%p4178_p2) target bundleno = 81 (0x51), region = 32 }
  0x28   : > { %219 = sbr.rel (!%p3924_p5) target bundleno = 81 (0x51), region = 36  ;;  %s220_s10 = sand.u32 (%p3924_p5), 1, %s3836_s20  }
  0x29   : > { %s2378_s12 = sshll.u32 (%p3924_p5), %s3840_s21, 1  ;;  %s3544_s16 = smul.u32 (%p3924_p5), 112, %s220_s10 }
  0x2a   : > { %s226_s17 = ssub.s32 (%p3924_p5), 3, %s2378_s12  ;;  %s3979_s1 = scalar_lea.sflag (%p3924_p5), [#allocation3], %s220_s10 }
  0x2b   : > { %p227_p3 = scmp.lt.s32.totalorder (%p3924_p5), %s226_s17, 2  ;;  %s224_s2 = scalar_lea.vmem (%p3924_p5), [#allocation2], %s3544_s16 }
  0x2d   : > { %s4203_s17 = smov (!%p227_p3, %s226_s17), 2 }
  0x2e   : > { %s2380_s23 = smul.u32 56, %s4203_s17 }
  0x30   : > { %s231_s25 = ssub.s32 112, %s2380_s23 }
  0x31   : > { %s232_s13 = sshll.u32 %s231_s25, 4 }
  0x32   : > { %233 = vsyncadd %s3979_s1, %s232_s13  ;;  %p3982_p7 = scmp.ne.s32.totalorder %s2380_s23, 0  ;;  %s3545_s26 = smul.u32 112, %s3840_s21 }
  0x33   : > { %s3987_s8 = sshll.u32 %s224_s2, 4  ;;  %s3989_s9 = smul.u32 896, %s4203_s17  ;;  %s242_s8 = int_to_ptr.vmem [resolvable:$true] %s3987_s8 }
  0x34   : > { %s237_s15 = scalar_lea.hbm %s4172_s0, %s3545_s26  ;;  %s3727_s26 = scalar_lea.hbm %s4172_s0, 168 }
  0x35   : > { %s239_s10 = sshll.u32 %s237_s15, 4  ;;  %s3718_s16 = sshrl.u32 %s3989_s9, 4  ;;  %s3995_s10 = int_to_ptr.hbm [resolvable:$true] %s239_s10 }
  0x36   : > { %s3716_s12 = sshra.s32 %s3995_s10, 4  ;;  %s3754_s23 = sshll.u32 %s3718_s16, 4  ;;  %s3717_s12 = int_to_ptr.hbm [resolvable:$true] %s3716_s12 }
  0x37   : > { %p3720_p5 = scmp.ne.s32.totalorder %s3754_s23, %s3989_s9  ;;  %s3721_s25 = sadd.s32 1, %s3718_s16 }
  0x38   : > { %p3728_p1 = scmp.lt.s32.totalorder %s3717_s12, %s4172_s0 }
  0x39   : > { %s4205_s25 = smov (!%p3720_p5, %s3721_s25), %s3718_s16 }
  0x3a   : > { %s3723_s17 = scalar_lea.hbm %s3717_s12, %s4205_s25 }
  0x3b   : > { %p3724_p8 = scmp.ne.s32.totalorder %s3717_s12, %s3723_s17  ;;  %p3729_p0 = scmp.lt.s32.totalorder %s3727_s26, %s3723_s17 }
  0x3d   : > { %p3725_p9 = pnand %p3724_p8, %p3982_p7  ;;  %p3730_p3 = por %p3729_p0, %p3728_p1 }
  0x3f   : > { %p3726_p10 = pneg %p3725_p9 }
  0x41   : > { %p3731_p2 = pnand %p3730_p3, %p3726_p10 }
  0x43   : > { %3734 = shalt.err (!%p3731_p2)
}
  0x44   : > { %s3735_s15 = sshra.s32 %s242_s8, 4  ;;  %s3849_s23 = smov [#allocation2]   ;;  %s3736_s15 = int_to_ptr.vmem [resolvable:$true] %s3735_s15 }
  0x45   : > { %s3742_s16 = scalar_lea.vmem %s3736_s15, %s4205_s25  ;;  %s3746_s13 = scalar_lea.vmem %s3849_s23, 224 }
  0x46   : > { %p3743_p5 = scmp.ne.s32.totalorder %s3736_s15, %s3742_s16  ;;  %p3748_p4 = scmp.lt.s32.totalorder %s3746_s13, %s3742_s16 }
  0x48   : > { %p3744_p8 = pnand %p3743_p5, %p3982_p7 }
  0x4a   : > { %p3745_p9 = pneg %p3744_p8 }
  0x4c   : > { %p3750_p12 = pnand %p3748_p4, %p3745_p9 }
  0x4e   : > { %3753 = shalt.err (!%p3750_p12)
}
  0x4f   : > { %s3850_s12 = smov 896   ;;  %s3851_s17 = smov 56  }
  0x50   : > { %247 = dma.hbm_to_vmem [thread:$0]  (%p3982_p7), %s3995_s10, %s3989_s9, %s242_s8, %s3979_s1, %s3850_s12, %s3850_s12, %s3851_s17  }
  0x51 PF: > { %253 = sbr.rel (%p3945_p13) target bundleno = 614 (0x266), region = 40  ;;  %s4022_s25 = sand.u32 (!%p3945_p13), 1, %s3832_s19  }
  0x52   : > { %s3546_s2 = smul.u32 (!%p3945_p13), 112, %s4022_s25  ;;  %s256_s26 = scalar_lea.sflag (!%p3945_p13), [#allocation3], %s4022_s25 }
  0x54   : > { %s4026_s11 = scalar_lea.vmem (!%p3945_p13), [#allocation2], %s3546_s2 }
  0x56   : > { %3811 = dma.done.wait (%p3930_p6), %s256_s26, 1792  }
  0x57   : > { %3813 = vsyncadd (%p3930_p6), %s256_s26, 4294965504  ;;  %p4191_p4 = scmp.eq.s32.totalorder %s3906_s22, 0 }
  0x59   : > { %3815 = dma.done.wait (%p4191_p4), [#allocation6], 25152   ;;  %p4192_p12 = pmov %p4191_p4 }
  0x5a   : > { %p4193_p13 = pmov %p4191_p4 }
  0x5b   : > { %3817 = vsyncadd (%p4192_p12), [#allocation6], 4294942144 }
  0x5c   : > { %3819 = dma.done.wait (%p4193_p13), [#allocation9], 4096   ;;  %p4194_p2 = pmov %p4191_p4 }
  0x5d   : > { %v2504_v0 = vld [vmem:[#allocation5 + $0xe0] sm:$0xf]  ;;  %v3345_v1 = vld [vmem:[#allocation5 + $0xec] sm:$0xf0]  ;;  %vm1521_vm0 = vcmask 130048   ;;  %s2389_s1 = sshll.u32 %s4022_s25, 4 }
  0x5e   : > { %3821 = vsyncadd (%p4194_p2), [#allocation9], 4294963200  ;;  %v2632_v2 = vld [vmem:[#allocation5 + $0x1e0] sm:$0xf]  ;;  %v2505_v3 = vor.u32 %v3345_v1, %v2504_v0  ;;  %v3377_v4 = vld [vmem:[#allocation5 + $0x1ec] sm:$0xf0] }
  0x5f   : > { %v2760_v5 = vld [vmem:[#allocation5 + $0x2e0] sm:$0xf]  ;;  %v3409_v6 = vld [vmem:[#allocation5 + $0x2ec] sm:$0xf0]  ;;  %v2633_v7 = vor.u32 %v3377_v4, %v2632_v2  ;;  %s301_s28 = scalar_lea.vmem [#allocation10], %s2389_s1  ;;  %s2248_s8 = scalar_lea.sflag [#allocation4], %s4022_s25 }
  0x60   : > { %v2761_v8 = vor.u32 %v3409_v6, %v2760_v5  ;;  %v2888_v9 = vld [vmem:[#allocation5 + $0x3e0] sm:$0xf]  ;;  %v3441_v10 = vld [vmem:[#allocation5 + $0x3ec] sm:$0xf0]  ;;  %1525 = vmatpush.bf16.msra.mxu0 %v2505_v3  ;;  %s3307_s9 = sshll.u32 (%p3937_p11), %s3906_s22, 1 }
  0x61   : > { %v2488_v11 = vld [vmem:[#allocation5 + $0xc0] sm:$0xf]  ;;  %v2889_v12 = vor.u32 %v3441_v10, %v2888_v9  ;;  %v3341_v13 = vld [vmem:[#allocation5 + $0xcc] sm:$0xf0]  ;;  %1539 = vmatpush.bf16.msra.mxu1 %v2633_v7  ;;  %s2256_s10 = ssub.s32 (%p3937_p11), 3, %s3307_s9 }
  0x62   : > { %v2616_v14 = vld [vmem:[#allocation5 + $0x1c0] sm:$0xf]  ;;  %v3373_v15 = vld [vmem:[#allocation5 + $0x1cc] sm:$0xf0]  ;;  %1553 = vmatpush.bf16.msra.mxu2 %v2761_v8  ;;  %v2489_v16 = vor.u32 %v3341_v13, %v2488_v11  ;;  %p2257_p6 = scmp.lt.s32.totalorder (%p3937_p11), %s2256_s10, 2 }
  0x63   : > { %v2617_v17 = vor.u32 %v3373_v15, %v2616_v14  ;;  %v2744_v18 = vld [vmem:[#allocation5 + $0x2c0] sm:$0xf]  ;;  %v3405_v19 = vld [vmem:[#allocation5 + $0x2cc] sm:$0xf0]  ;;  %1567 = vmatpush.bf16.msra.mxu3 %v2889_v12 }
  0x64   : > { %v2872_v20 = vld [vmem:[#allocation5 + $0x3c0] sm:$0xf]  ;;  %v2745_v21 = vor.u32 %v3405_v19, %v2744_v18  ;;  %v3437_v22 = vld [vmem:[#allocation5 + $0x3cc] sm:$0xf0]  ;;  %1526 = vmatpush.bf16.msra.mxu0 %v2489_v16 }
  0x65   : > { %v2472_v23 = vld [vmem:[#allocation5 + $0xa0] sm:$0xf]  ;;  %v3337_v24 = vld [vmem:[#allocation5 + $0xac] sm:$0xf0]  ;;  %v2873_v25 = vor.u32 %v3437_v22, %v2872_v20  ;;  %1540 = vmatpush.bf16.msra.mxu1 %v2617_v17 }
  0x66   : > { %v2600_v26 = vld [vmem:[#allocation5 + $0x1a0] sm:$0xf]  ;;  %v3369_v27 = vld [vmem:[#allocation5 + $0x1ac] sm:$0xf0]  ;;  %v2473_v29 = vor.u32 %v3337_v24, %v2472_v23  ;;  %1554 = vmatpush.bf16.msra.mxu2 %v2745_v21 }
  0x67   : > { %v2728_v28 = vld [vmem:[#allocation5 + $0x2a0] sm:$0xf]  ;;  %v3401_v30 = vld [vmem:[#allocation5 + $0x2ac] sm:$0xf0]  ;;  %v2601_v33 = vor.u32 %v3369_v27, %v2600_v26  ;;  %1568 = vmatpush.bf16.msra.mxu3 %v2873_v25 }
  0x68   : > { %v2856_v31 = vld [vmem:[#allocation5 + $0x3a0] sm:$0xf]  ;;  %v3433_v32 = vld [vmem:[#allocation5 + $0x3ac] sm:$0xf0]  ;;  %v2729_v34 = vor.u32 %v3401_v30, %v2728_v28  ;;  %1527 = vmatpush.bf16.msra.mxu0 %v2473_v29 }
  0x69   : > { %v2456_v35 = vld [vmem:[#allocation5 + $0x80] sm:$0xf]  ;;  %v3333_v36 = vld [vmem:[#allocation5 + $0x8c] sm:$0xf0]  ;;  %v2857_v38 = vor.u32 %v3433_v32, %v2856_v31  ;;  %1541 = vmatpush.bf16.msra.mxu1 %v2601_v33  ;;  %v3343_v32 = vld [vmem:[#allocation5 + $0xe4] sm:$0xf] }
  0x6a   : > { %v2584_v37 = vld [vmem:[#allocation5 + $0x180] sm:$0xf]  ;;  %v3365_v39 = vld [vmem:[#allocation5 + $0x18c] sm:$0xf0]  ;;  %v2457_v44 = vor.u32 %v3333_v36, %v2456_v35  ;;  %1555 = vmatpush.bf16.msra.mxu2 %v2729_v34  ;;  %v2506_v33 = vld [vmem:[#allocation5 + $0xf0] sm:$0xf0] }
  0x6b   : > { %v2712_v40 = vld [vmem:[#allocation5 + $0x280] sm:$0xf]  ;;  %v3397_v41 = vld [vmem:[#allocation5 + $0x28c] sm:$0xf0]  ;;  %v2585_v45 = vor.u32 %v3365_v39, %v2584_v37  ;;  %1569 = vmatpush.bf16.msra.mxu3 %v2857_v38  ;;  %v323_v36 = vld [vmem:[%s4026_s11 + $0x48] sm:$0xff] }
  0x6c   : > { %v2840_v42 = vld [vmem:[#allocation5 + $0x380] sm:$0xf]  ;;  %v3429_v43 = vld [vmem:[#allocation5 + $0x38c] sm:$0xf0]  ;;  %v2713_v46 = vor.u32 %v3397_v41, %v2712_v40  ;;  %1528 = vmatpush.bf16.msra.mxu0 %v2457_v44  ;;  %v3375_v41 = vld [vmem:[#allocation5 + $0x1e4] sm:$0xf] }
  0x6d   : > { %v2440_v47 = vld [vmem:[#allocation5 + $0x60] sm:$0xf]  ;;  %v3329_v48 = vld [vmem:[#allocation5 + $0x6c] sm:$0xf0]  ;;  %v2841_v50 = vor.u32 %v3429_v43, %v2840_v42  ;;  %1542 = vmatpush.bf16.msra.mxu1 %v2585_v45  ;;  %v321_v43 = vld [vmem:[%s4026_s11 + $0x38] sm:$0xff] }
  0x6e   : > { %v2568_v49 = vld [vmem:[#allocation5 + $0x160] sm:$0xf]  ;;  %v3361_v51 = vld [vmem:[#allocation5 + $0x16c] sm:$0xf0]  ;;  %v2441_v56 = vor.u32 %v3329_v48, %v2440_v47  ;;  %1556 = vmatpush.bf16.msra.mxu2 %v2713_v46  ;;  %v2634_v46 = vld [vmem:[#allocation5 + $0x1f0] sm:$0xf0] }
  0x6f   : > { %v2696_v52 = vld [vmem:[#allocation5 + $0x260] sm:$0xf]  ;;  %v3393_v53 = vld [vmem:[#allocation5 + $0x26c] sm:$0xf0]  ;;  %v2569_v57 = vor.u32 %v3361_v51, %v2568_v49  ;;  %1570 = vmatpush.bf16.msra.mxu3 %v2841_v50  ;;  %v317_v47 = vld [vmem:[%s4026_s11 + $0x18] sm:$0xff]  ;;  %v2509_v50 = vor.u32 %v3343_v32, %v2506_v33 }
  0x70   : > { %v2824_v54 = vld [vmem:[#allocation5 + $0x360] sm:$0xf]  ;;  %v3425_v55 = vld [vmem:[#allocation5 + $0x36c] sm:$0xf0]  ;;  %v2697_v58 = vor.u32 %v3393_v53, %v2696_v52  ;;  %1529 = vmatpush.bf16.msra.mxu0 %v2441_v56 }
  0x71   : > { %v2424_v59 = vld [vmem:[#allocation5 + $0x40] sm:$0xf]  ;;  %v3325_v60 = vld [vmem:[#allocation5 + $0x4c] sm:$0xf0]  ;;  %v2825_v62 = vor.u32 %v3425_v55, %v2824_v54  ;;  %1543 = vmatpush.bf16.msra.mxu1 %v2569_v57  ;;  %v3339_v57 = vld [vmem:[#allocation5 + $0xc4] sm:$0xf] }
  0x72   : > { %v2552_v61 = vld [vmem:[#allocation5 + $0x140] sm:$0xf]  ;;  %v3357_v63 = vld [vmem:[#allocation5 + $0x14c] sm:$0xf0]  ;;  %v2425_v4 = vor.u32 %v3325_v60, %v2424_v59  ;;  %1557 = vmatpush.bf16.msra.mxu2 %v2697_v58  ;;  %v2490_v58 = vld [vmem:[#allocation5 + $0xd0] sm:$0xf0] }
  0x73   : > { %v2680_v0 = vld [vmem:[#allocation5 + $0x240] sm:$0xf]  ;;  %v3389_v1 = vld [vmem:[#allocation5 + $0x24c] sm:$0xf0]  ;;  %v2553_v6 = vor.u32 %v3357_v63, %v2552_v61  ;;  %1571 = vmatpush.bf16.msra.mxu3 %v2825_v62  ;;  %v315_v61 = vld [vmem:[%s4026_s11 + $0x8] sm:$0xff]  ;;  %v2637_v63 = vor.u32 %v3375_v41, %v2634_v46 }
  0x74   : > { %v2808_v2 = vld [vmem:[#allocation5 + $0x340] sm:$0xf]  ;;  %v3421_v3 = vld [vmem:[#allocation5 + $0x34c] sm:$0xf0]  ;;  %v2681_v7 = vor.u32 %v3389_v1, %v2680_v0  ;;  %1530 = vmatpush.bf16.msra.mxu0 %v2425_v4  ;;  %v3371_v1 = vld [vmem:[#allocation5 + $0x1c4] sm:$0xf]  ;;  %v2493_v4 = vor.u32 %v3339_v57, %v2490_v58 }
  0x75   : > { %v2408_v5 = vld [vmem:[#allocation5 + $0x20] sm:$0xf]  ;;  %v3321_v8 = vld [vmem:[#allocation5 + $0x2c] sm:$0xf0]  ;;  %v2809_v11 = vor.u32 %v3421_v3, %v2808_v2  ;;  %1544 = vmatpush.bf16.msra.mxu1 %v2553_v6  ;;  %v2618_v2 = vld [vmem:[#allocation5 + $0x1d0] sm:$0xf0] }
  0x76   : > { %v2536_v9 = vld [vmem:[#allocation5 + $0x120] sm:$0xf]  ;;  %v3353_v10 = vld [vmem:[#allocation5 + $0x12c] sm:$0xf0]  ;;  %v2409_v18 = vor.u32 %v3321_v8, %v2408_v5  ;;  %1558 = vmatpush.bf16.msra.mxu2 %v2681_v7  ;;  %v2570_v41 = vld [vmem:[#allocation5 + $0x170] sm:$0xf0] }
  0x77   : > { %v2664_v12 = vld [vmem:[#allocation5 + $0x220] sm:$0xf]  ;;  %v3385_v13 = vld [vmem:[#allocation5 + $0x22c] sm:$0xf0]  ;;  %v2537_v23 = vor.u32 %v3353_v10, %v2536_v9  ;;  %1572 = vmatpush.bf16.msra.mxu3 %v2809_v11  ;;  %v3335_v10 = vld [vmem:[#allocation5 + $0xa4] sm:$0xf] }
  0x78   : > { %v2792_v14 = vld [vmem:[#allocation5 + $0x320] sm:$0xf]  ;;  %v3417_v15 = vld [vmem:[#allocation5 + $0x32c] sm:$0xf0]  ;;  %v2665_v24 = vor.u32 %v3385_v13, %v2664_v12  ;;  %1531 = vmatpush.bf16.msra.mxu0 %v2409_v18  ;;  %v2474_v11 = vld [vmem:[#allocation5 + $0xb0] sm:$0xf0]  ;;  %v2621_v12 = vor.u32 %v3371_v1, %v2618_v2 }
  0x79   : > { %v2392_v16 = vld [vmem:[#allocation5] sm:$0xf]  ;;  %v3317_v17 = vld [vmem:[#allocation5 + $0xc] sm:$0xf0]  ;;  %v2793_v28 = vor.u32 %v3417_v15, %v2792_v14  ;;  %1545 = vmatpush.bf16.msra.mxu1 %v2537_v23  ;;  %v3367_v14 = vld [vmem:[#allocation5 + $0x1a4] sm:$0xf] }
  0x7a   : > { %v2520_v19 = vld [vmem:[#allocation5 + $0x100] sm:$0xf]  ;;  %v3349_v20 = vld [vmem:[#allocation5 + $0x10c] sm:$0xf0]  ;;  %v2393_v35 = vor.u32 %v3317_v17, %v2392_v16  ;;  %1559 = vmatpush.bf16.msra.mxu2 %v2665_v24  ;;  %v2602_v15 = vld [vmem:[#allocation5 + $0x1b0] sm:$0xf0]  ;;  %v2477_v17 = vor.u32 %v3335_v10, %v2474_v11 }
  0x7b   : > { %v2648_v21 = vld [vmem:[#allocation5 + $0x200] sm:$0xf]  ;;  %v3381_v22 = vld [vmem:[#allocation5 + $0x20c] sm:$0xf0]  ;;  %v2521_v39 = vor.u32 %v3349_v20, %v2520_v19  ;;  %1573 = vmatpush.bf16.msra.mxu3 %v2793_v28  ;;  %v2458_v23 = vld [vmem:[#allocation5 + $0x90] sm:$0xf0]  ;;  %v2605_v24 = vor.u32 %v3367_v14, %v2602_v15 }
  0x7c   : > { %v2776_v25 = vld [vmem:[#allocation5 + $0x300] sm:$0xf]  ;;  %v3413_v26 = vld [vmem:[#allocation5 + $0x30c] sm:$0xf0]  ;;  %v2649_v40 = vor.u32 %v3381_v22, %v2648_v21  ;;  %1532 = vmatpush.bf16.msra.mxu0 %v2393_v35  ;;  %v3331_v22 = vld [vmem:[#allocation5 + $0x84] sm:$0xf] }
  0x7d   : > { %v3016_v27 = vld [vmem:[#allocation5 + $0x4e0] sm:$0xf]  ;;  %v3473_v29 = vld [vmem:[#allocation5 + $0x4ec] sm:$0xf0]  ;;  %v2777_v44 = vor.u32 %v3413_v26, %v2776_v25  ;;  %1546 = vmatpush.bf16.msra.mxu1 %v2521_v39  ;;  %v3363_v26 = vld [vmem:[#allocation5 + $0x184] sm:$0xf] }
  0x7e   : > { %v3144_v30 = vld [vmem:[#allocation5 + $0x5e0] sm:$0xf]  ;;  %v3505_v31 = vld [vmem:[#allocation5 + $0x5ec] sm:$0xf0]  ;;  %v3017_v45 = vor.u32 %v3473_v29, %v3016_v27  ;;  %1560 = vmatpush.bf16.msra.mxu2 %v2649_v40  ;;  %v2586_v27 = vld [vmem:[#allocation5 + $0x190] sm:$0xf0]  ;;  %v2461_v29 = vor.u32 %v3331_v22, %v2458_v23 }
  0x7f   : > { %v316_v34 = vld [vmem:[%s4026_s11 + $0x10] sm:$0xff]  ;;  %v314_v42 = vld [vmem:[%s4026_s11] sm:$0xff]  ;;  %v3145_v49 = vor.u32 %v3505_v31, %v3144_v30  ;;  %1574 = vmatpush.bf16.msra.mxu3 %v2777_v44 }
  0x80   : > { %v3160_v37 = vld [vmem:[#allocation5 + $0x600] sm:$0xf]  ;;  %v3509_v38 = vld [vmem:[#allocation5 + $0x60c] sm:$0xf0]  ;;  %v4046_v54 = vpack.c.bf16 %v323_v36, %v316_v34  ;;  %v4048_v55 = vpack.c.bf16 %v321_v43, %v314_v42  ;;  %1581 = vmatpush.bf16.msrb.mxu0 %v3017_v45  ;;  %v3327_v34 = vld [vmem:[#allocation5 + $0x64] sm:$0xf] }
  0x81   : > { %v324_v48 = vld [vmem:[%s4026_s11 + $0x50] sm:$0xff]  ;;  %v3161_v59 = vor.u32 %v3509_v38, %v3160_v37  ;;  %v322_v62 = vld [vmem:[%s4026_s11 + $0x40] sm:$0xff]  ;;  %1595 = vmatpush.bf16.msrb.mxu1 %v3145_v49  ;;  %v327_v37 = vld [vmem:[%s4026_s11 + $0x68] sm:$0xff]  ;;  %v2589_v38 = vor.u32 %v3363_v26, %v2586_v27 }
  0x82   : > { %v3000_v51 = vld [vmem:[#allocation5 + $0x4c0] sm:$0xf]  ;;  %v3469_v52 = vld [vmem:[#allocation5 + $0x4cc] sm:$0xf0]  ;;  %v4050_v60 = vpack.c.bf16 %v324_v48, %v317_v47  ;;  %1561 = vmatmul.bf16.vlgmr.msra.gmra.mxu2 %v4046_v54  ;;  %1533 = vmatmul.bf16.vlgmr.msra.gmra.mxu0 %v4048_v55  ;;  %v4056_v8 = vpack.c.bf16 %v322_v62, %v315_v61  ;;  %v2442_v35 = vld [vmem:[#allocation5 + $0x70] sm:$0xf0] }
  0x83   : > { %v3128_v53 = vld [vmem:[#allocation5 + $0x5c0] sm:$0xf]  ;;  %v3501_v56 = vld [vmem:[#allocation5 + $0x5cc] sm:$0xf0]  ;;  %v3001_v0 = vor.u32 %v3469_v52, %v3000_v51  ;;  %1623 = vmatpush.bf16.msrb.mxu3 %v2509_v50  ;;  %1616 = vmatpush.bf16.msrb.mxu2 %v3161_v59  ;;  %v3359_v40 = vld [vmem:[#allocation5 + $0x164] sm:$0xf]  ;;  %v2445_v43 = vor.u32 %v3327_v34, %v2442_v35 }
  0x84   : > { %v3129_v3 = vor.u32 %v3501_v56, %v3128_v53  ;;  %v2984_v5 = vld [vmem:[#allocation5 + $0x4a0] sm:$0xf]  ;;  %v3465_v6 = vld [vmem:[#allocation5 + $0x4ac] sm:$0xf0]  ;;  %1575 = vmatmul.bf16.vlgmr.msra.gmra.mxu3 %v4050_v60  ;;  %1547 = vmatmul.bf16.vlgmr.msra.gmra.mxu1 %v4056_v8  ;;  %v3323_v48 = vld [vmem:[#allocation5 + $0x44] sm:$0xf]  ;;  %v2573_v51 = vor.u32 %v3359_v40, %v2570_v41 }
  0x85   : > { %v3112_v7 = vld [vmem:[#allocation5 + $0x5a0] sm:$0xf]  ;;  %v3497_v9 = vld [vmem:[#allocation5 + $0x5ac] sm:$0xf0]  ;;  %1582 = vmatpush.bf16.msrb.mxu0 %v3001_v0  ;;  %v2985_v13 = vor.u32 %v3465_v6, %v2984_v5  ;;  %v2426_v49 = vld [vmem:[#allocation5 + $0x50] sm:$0xf0] }
  0x86   : > { %1596 = vmatpush.bf16.msrb.mxu1 %v3129_v3  ;;  %v3113_v16 = vor.u32 %v3497_v9, %v3112_v7  ;;  %v2968_v18 = vld [vmem:[#allocation5 + $0x480] sm:$0xf]  ;;  %v3461_v19 = vld [vmem:[#allocation5 + $0x48c] sm:$0xf0]  ;;  %v3355_v53 = vld [vmem:[#allocation5 + $0x144] sm:$0xf]  ;;  %v2429_v58 = vor.u32 %v3323_v48, %v2426_v49 }
  0x87   : > { %1637 = vmatpush.bf16.msra.mxu2 %v2637_v63  ;;  %1624 = vmatpush.bf16.msrb.mxu3 %v2493_v4  ;;  %v3096_v20 = vld [vmem:[#allocation5 + $0x580] sm:$0xf]  ;;  %v3493_v21 = vld [vmem:[#allocation5 + $0x58c] sm:$0xf0]  ;;  %v2969_v25 = vor.u32 %v3461_v19, %v2968_v18  ;;  %v2554_v56 = vld [vmem:[#allocation5 + $0x150] sm:$0xf0] }
  0x88   : > { %v3097_v28 = vor.u32 %v3493_v21, %v3096_v20  ;;  %v2952_v30 = vld [vmem:[#allocation5 + $0x460] sm:$0xf]  ;;  %v3457_v31 = vld [vmem:[#allocation5 + $0x46c] sm:$0xf0]  ;;  %v3319_v0 = vld [vmem:[#allocation5 + $0x24] sm:$0xf]  ;;  %v2557_v4 = vor.u32 %v3355_v53, %v2554_v56 }
  0x89   : > { %1583 = vmatpush.bf16.msrb.mxu0 %v2985_v13  ;;  %v3080_v32 = vld [vmem:[#allocation5 + $0x560] sm:$0xf]  ;;  %v3489_v33 = vld [vmem:[#allocation5 + $0x56c] sm:$0xf0]  ;;  %v2953_v39 = vor.u32 %v3457_v31, %v2952_v30  ;;  %v2410_v1 = vld [vmem:[#allocation5 + $0x30] sm:$0xf0] }
  0x8a   : > { %1597 = vmatpush.bf16.msrb.mxu1 %v3113_v16  ;;  %v320_v36 = vld [vmem:[%s4026_s11 + $0x30] sm:$0xff]  ;;  %v3081_v42 = vor.u32 %v3489_v33, %v3080_v32  ;;  %v2413_v11 = vor.u32 %v3319_v0, %v2410_v1  ;;  %v318_v23 = vld [vmem:[%s4026_s11 + $0x20] sm:$0xff] }
  0x8b   : > { %1638 = vmatpush.bf16.msra.mxu2 %v2621_v12  ;;  %1625 = vmatpush.bf16.msrb.mxu3 %v2477_v17  ;;  %v2936_v44 = vld [vmem:[#allocation5 + $0x440] sm:$0xf]  ;;  %v3453_v45 = vld [vmem:[#allocation5 + $0x44c] sm:$0xf0]  ;;  %v4062_v50 = vpack.c.bf16 %v327_v37, %v320_v36  ;;  %v3351_v2 = vld [vmem:[#allocation5 + $0x124] sm:$0xf] }
  0x8c   : > { %v3064_v46 = vld [vmem:[#allocation5 + $0x540] sm:$0xf]  ;;  %v3485_v47 = vld [vmem:[#allocation5 + $0x54c] sm:$0xf0]  ;;  %v2937_v52 = vor.u32 %v3453_v45, %v2936_v44  ;;  %v2538_v3 = vld [vmem:[#allocation5 + $0x130] sm:$0xf0] }
  0x8d   : > { %1584 = vmatpush.bf16.msrb.mxu0 %v2969_v25  ;;  %v3065_v57 = vor.u32 %v3485_v47, %v3064_v46  ;;  %v2920_v59 = vld [vmem:[#allocation5 + $0x420] sm:$0xf]  ;;  %v3449_v61 = vld [vmem:[#allocation5 + $0x42c] sm:$0xf0]  ;;  %v3315_v13 = vld [vmem:[#allocation5 + $0x4] sm:$0xf]  ;;  %v2541_v21 = vor.u32 %v3351_v2, %v2538_v3 }
  0x8e   : > { %1598 = vmatpush.bf16.msrb.mxu1 %v3097_v28  ;;  %v3048_v62 = vld [vmem:[#allocation5 + $0x520] sm:$0xf]  ;;  %v3481_v63 = vld [vmem:[#allocation5 + $0x52c] sm:$0xf0]  ;;  %v2921_v5 = vor.u32 %v3449_v61, %v2920_v59  ;;  %v2394_v14 = vld [vmem:[#allocation5 + $0x10] sm:$0xf0] }
  0x8f   : > { %1639 = vmatpush.bf16.msra.mxu2 %v2605_v24  ;;  %1626 = vmatpush.bf16.msrb.mxu3 %v2461_v29  ;;  %v2904_v6 = vld [vmem:[#allocation5 + $0x400] sm:$0xf]  ;;  %v3445_v7 = vld [vmem:[#allocation5 + $0x40c] sm:$0xf0]  ;;  %v3049_v10 = vor.u32 %v3481_v63, %v3048_v62  ;;  %v3407_v15 = vld [vmem:[#allocation5 + $0x2e4] sm:$0xf]  ;;  %v2397_v27 = vor.u32 %v3315_v13, %v2394_v14 }
  0x90   : > { %v3032_v9 = vld [vmem:[#allocation5 + $0x500] sm:$0xf]  ;;  %v3477_v12 = vld [vmem:[#allocation5 + $0x50c] sm:$0xf0]  ;;  %v2762_v16 = vld [vmem:[#allocation5 + $0x2f0] sm:$0xf0]  ;;  %v2905_v22 = vor.u32 %v3445_v7, %v2904_v6 }
  0x91   : > { %1585 = vmatpush.bf16.msrb.mxu0 %v2953_v39  ;;  %v3439_v17 = vld [vmem:[#allocation5 + $0x3e4] sm:$0xf]  ;;  %v2890_v18 = vld [vmem:[#allocation5 + $0x3f0] sm:$0xf0]  ;;  %v325_v24 = vld [vmem:[%s4026_s11 + $0x58] sm:$0xff]  ;;  %v3033_v26 = vor.u32 %v3477_v12, %v3032_v9  ;;  %v2765_v31 = vor.u32 %v3407_v15, %v2762_v16 }
  0x92   : > { %1599 = vmatpush.bf16.msrb.mxu1 %v3081_v42  ;;  %3174 = vmatmul.msk.bf16.vlgmr.msrb.gmra.mxu2 %vm1521_vm0, %v4062_v50  ;;  %v3471_v19 = vld [vmem:[#allocation5 + $0x4e4] sm:$0xf]  ;;  %v3018_v20 = vld [vmem:[#allocation5 + $0x4f0] sm:$0xf0]  ;;  %v319_v29 = vld [vmem:[%s4026_s11 + $0x28] sm:$0xff]  ;;  %v2893_v32 = vor.u32 %v3439_v17, %v2890_v18  ;;  %v4070_v37 = vpack.c.bf16 %v325_v24, %v318_v23 }
  0x93   : > { %1640 = vmatpush.bf16.msra.mxu2 %v2589_v38  ;;  %1627 = vmatpush.bf16.msrb.mxu3 %v2445_v43  ;;  %v3347_v25 = vld [vmem:[#allocation5 + $0x104] sm:$0xf]  ;;  %v2522_v28 = vld [vmem:[#allocation5 + $0x110] sm:$0xf0]  ;;  %v3021_v36 = vor.u32 %v3471_v19, %v3018_v20 }
  0x94   : > { %v326_v30 = vld [vmem:[%s4026_s11 + $0x60] sm:$0xff]  ;;  %v2525_v41 = vor.u32 %v3347_v25, %v2522_v28 }
  0x95   : > { %1586 = vmatpush.bf16.msrb.mxu0 %v2937_v52  ;;  %v3503_v33 = vld [vmem:[#allocation5 + $0x5e4] sm:$0xf]  ;;  %v3146_v34 = vld [vmem:[#allocation5 + $0x5f0] sm:$0xf0]  ;;  %v4072_v42 = vpack.c.bf16 %v326_v30, %v319_v29 }
  0x96   : > { %1600 = vmatpush.bf16.msrb.mxu1 %v3065_v57  ;;  %v3403_v35 = vld [vmem:[#allocation5 + $0x2c4] sm:$0xf]  ;;  %v2746_v38 = vld [vmem:[#allocation5 + $0x2d0] sm:$0xf0]  ;;  %v3149_v45 = vor.u32 %v3503_v33, %v3146_v34 }
  0x97   : > { %1641 = vmatpush.bf16.msra.mxu2 %v2573_v51  ;;  %1628 = vmatpush.bf16.msrb.mxu3 %v2429_v58  ;;  %v3435_v39 = vld [vmem:[#allocation5 + $0x3c4] sm:$0xf]  ;;  %v2874_v40 = vld [vmem:[#allocation5 + $0x3d0] sm:$0xf0]  ;;  %v2749_v46 = vor.u32 %v3403_v35, %v2746_v38 }
  0x98   : > { %v3467_v43 = vld [vmem:[#allocation5 + $0x4c4] sm:$0xf]  ;;  %v3002_v44 = vld [vmem:[#allocation5 + $0x4d0] sm:$0xf0]  ;;  %v2877_v47 = vor.u32 %v3435_v39, %v2874_v40 }
  0x99   : > { %1587 = vmatpush.bf16.msrb.mxu0 %v2921_v5  ;;  %v3499_v48 = vld [vmem:[#allocation5 + $0x5c4] sm:$0xf]  ;;  %v3130_v49 = vld [vmem:[#allocation5 + $0x5d0] sm:$0xf0]  ;;  %v3005_v52 = vor.u32 %v3467_v43, %v3002_v44 }
  0x9a   : > { %1601 = vmatpush.bf16.msrb.mxu1 %v3049_v10  ;;  %v3399_v51 = vld [vmem:[#allocation5 + $0x2a4] sm:$0xf]  ;;  %v2730_v53 = vld [vmem:[#allocation5 + $0x2b0] sm:$0xf0]  ;;  %v3133_v61 = vor.u32 %v3499_v48, %v3130_v49 }
  0x9b   : > { %1642 = vmatpush.bf16.msra.mxu2 %v2557_v4  ;;  %1629 = vmatpush.bf16.msrb.mxu3 %v2413_v11  ;;  %v3431_v56 = vld [vmem:[#allocation5 + $0x3a4] sm:$0xf]  ;;  %v2858_v57 = vld [vmem:[#allocation5 + $0x3b0] sm:$0xf0]  ;;  %v2733_v62 = vor.u32 %v3399_v51, %v2730_v53 }
  0x9c   : > { %v3463_v58 = vld [vmem:[#allocation5 + $0x4a4] sm:$0xf]  ;;  %v2986_v59 = vld [vmem:[#allocation5 + $0x4b0] sm:$0xf0]  ;;  %v2861_v63 = vor.u32 %v3431_v56, %v2858_v57 }
  0x9d   : > { %1588 = vmatpush.bf16.msrb.mxu0 %v2905_v22  ;;  %v3495_v0 = vld [vmem:[#allocation5 + $0x5a4] sm:$0xf]  ;;  %v3114_v1 = vld [vmem:[#allocation5 + $0x5b0] sm:$0xf0]  ;;  %v2989_v3 = vor.u32 %v3463_v58, %v2986_v59 }
  0x9e   : > { %1602 = vmatpush.bf16.msrb.mxu1 %v3033_v26  ;;  %v3395_v2 = vld [vmem:[#allocation5 + $0x284] sm:$0xf]  ;;  %v2714_v4 = vld [vmem:[#allocation5 + $0x290] sm:$0xf0]  ;;  %v3117_v10 = vor.u32 %v3495_v0, %v3114_v1  ;;  %v2512_v0 = vld [vmem:[#allocation5 + $0xe8] sm:$0xf] }
  0x9f   : > { %1643 = vmatpush.bf16.msra.mxu2 %v2541_v21  ;;  %1630 = vmatpush.bf16.msrb.mxu3 %v2397_v27  ;;  %v3427_v5 = vld [vmem:[#allocation5 + $0x384] sm:$0xf]  ;;  %v2842_v6 = vld [vmem:[#allocation5 + $0x390] sm:$0xf0]  ;;  %v2717_v11 = vor.u32 %v3395_v2, %v2714_v4  ;;  %v3346_v1 = vld [vmem:[#allocation5 + $0xf4] sm:$0xf0] }
  0xa0   : > { %1589 = vmatmul.bf16.vlgmr.msrb.gmra.mxu0 %v4070_v37  ;;  %v3459_v7 = vld [vmem:[#allocation5 + $0x484] sm:$0xf]  ;;  %v2970_v9 = vld [vmem:[#allocation5 + $0x490] sm:$0xf0]  ;;  %v2845_v12 = vor.u32 %v3427_v5, %v2842_v6  ;;  %v2768_v5 = vld [vmem:[#allocation5 + $0x2e8] sm:$0xf] }
  0xa1   : > { %1651 = vmatpush.bf16.msra.mxu0 %v2765_v31  ;;  %1603 = vmatmul.bf16.vlgmr.msrb.gmra.mxu1 %v4072_v42  ;;  %v3491_v13 = vld [vmem:[#allocation5 + $0x584] sm:$0xf]  ;;  %v3098_v14 = vld [vmem:[#allocation5 + $0x590] sm:$0xf0]  ;;  %v2973_v16 = vor.u32 %v3459_v7, %v2970_v9  ;;  %v3410_v6 = vld [vmem:[#allocation5 + $0x2f4] sm:$0xf0] }
  0xa2   : > { %1665 = vmatpush.bf16.msra.mxu1 %v2893_v32  ;;  %1631 = vmatmul.bf16.vlgmr.msrb.gmra.mxu3 %v4048_v55  ;;  %v3391_v15 = vld [vmem:[#allocation5 + $0x264] sm:$0xf]  ;;  %v2698_v17 = vld [vmem:[#allocation5 + $0x270] sm:$0xf0]  ;;  %v3101_v22 = vor.u32 %v3491_v13, %v3098_v14  ;;  %v2513_v13 = vor.u32 %v3346_v1, %v2512_v0  ;;  %v2896_v14 = vld [vmem:[#allocation5 + $0x3e8] sm:$0xf] }
  0xa3   : > { %1679 = vmatpush.bf16.msra.mxu3 %v3021_v36  ;;  %1644 = vmatpush.bf16.msra.mxu2 %v2525_v41  ;;  %v3423_v18 = vld [vmem:[#allocation5 + $0x364] sm:$0xf]  ;;  %v2826_v19 = vld [vmem:[#allocation5 + $0x370] sm:$0xf0]  ;;  %v2701_v23 = vor.u32 %v3391_v15, %v2698_v17  ;;  %v3442_v15 = vld [vmem:[#allocation5 + $0x3f4] sm:$0xf0] }
  0xa4   : > { %v3455_v20 = vld [vmem:[#allocation5 + $0x464] sm:$0xf]  ;;  %v2954_v21 = vld [vmem:[#allocation5 + $0x470] sm:$0xf0]  ;;  %v2829_v24 = vor.u32 %v3423_v18, %v2826_v19  ;;  %v2640_v17 = vld [vmem:[#allocation5 + $0x1e8] sm:$0xf]  ;;  %v2769_v19 = vor.u32 %v3410_v6, %v2768_v5 }
  0xa5   : > { %1652 = vmatpush.bf16.msra.mxu0 %v2749_v46  ;;  %v3487_v25 = vld [vmem:[#allocation5 + $0x564] sm:$0xf]  ;;  %v3082_v26 = vld [vmem:[#allocation5 + $0x570] sm:$0xf0]  ;;  %v2957_v28 = vor.u32 %v3455_v20, %v2954_v21  ;;  %v3378_v18 = vld [vmem:[#allocation5 + $0x1f4] sm:$0xf0] }
  0xa6   : > { %1666 = vmatpush.bf16.msra.mxu1 %v2877_v47  ;;  %1645 = vmatmul.bf16.vlgmr.msra.gmra.mxu2 %v4056_v8  ;;  %v3387_v27 = vld [vmem:[#allocation5 + $0x244] sm:$0xf]  ;;  %v2682_v29 = vld [vmem:[#allocation5 + $0x250] sm:$0xf0]  ;;  %v3085_v34 = vor.u32 %v3487_v25, %v3082_v26  ;;  %v2496_v21 = vld [vmem:[#allocation5 + $0xc8] sm:$0xf]  ;;  %v2641_v26 = vor.u32 %v3378_v18, %v2640_v17 }
  0xa7   : > { %1693 = vmatpush.bf16.msrb.mxu2 %v3149_v45  ;;  %1680 = vmatpush.bf16.msra.mxu3 %v3005_v52  ;;  %v3419_v30 = vld [vmem:[#allocation5 + $0x344] sm:$0xf]  ;;  %v2810_v31 = vld [vmem:[#allocation5 + $0x350] sm:$0xf0]  ;;  %v2685_v35 = vor.u32 %v3387_v27, %v2682_v29  ;;  %v3406_v25 = vld [vmem:[#allocation5 + $0x2d4] sm:$0xf0] }
  0xa8   : > { %v3451_v32 = vld [vmem:[#allocation5 + $0x444] sm:$0xf]  ;;  %v2938_v33 = vld [vmem:[#allocation5 + $0x450] sm:$0xf0]  ;;  %v2813_v36 = vor.u32 %v3419_v30, %v2810_v31  ;;  %v2880_v27 = vld [vmem:[#allocation5 + $0x3c8] sm:$0xf] }
  0xa9   : > { %1653 = vmatpush.bf16.msra.mxu0 %v2733_v62  ;;  %v3483_v38 = vld [vmem:[#allocation5 + $0x544] sm:$0xf]  ;;  %v3066_v39 = vld [vmem:[#allocation5 + $0x550] sm:$0xf0]  ;;  %v2941_v41 = vor.u32 %v3451_v32, %v2938_v33  ;;  %v2624_v30 = vld [vmem:[#allocation5 + $0x1c8] sm:$0xf] }
  0xaa   : > { %1667 = vmatpush.bf16.msra.mxu1 %v2861_v63  ;;  %v3383_v40 = vld [vmem:[#allocation5 + $0x224] sm:$0xf]  ;;  %v2666_v43 = vld [vmem:[#allocation5 + $0x230] sm:$0xf0]  ;;  %v3069_v48 = vor.u32 %v3483_v38, %v3066_v39  ;;  %v3374_v31 = vld [vmem:[#allocation5 + $0x1d4] sm:$0xf0] }
  0xab   : > { %1694 = vmatpush.bf16.msrb.mxu2 %v3133_v61  ;;  %1681 = vmatpush.bf16.msra.mxu3 %v2989_v3  ;;  %v3415_v44 = vld [vmem:[#allocation5 + $0x324] sm:$0xf]  ;;  %v2794_v45 = vld [vmem:[#allocation5 + $0x330] sm:$0xf0]  ;;  %v2669_v52 = vor.u32 %v3383_v40, %v2666_v43  ;;  %v2480_v33 = vld [vmem:[#allocation5 + $0xa8] sm:$0xf]  ;;  %v2625_v39 = vor.u32 %v3374_v31, %v2624_v30 }
  0xac   : > { %v3447_v46 = vld [vmem:[#allocation5 + $0x424] sm:$0xf]  ;;  %v2922_v47 = vld [vmem:[#allocation5 + $0x430] sm:$0xf0]  ;;  %v2797_v53 = vor.u32 %v3415_v44, %v2794_v45  ;;  %v3402_v38 = vld [vmem:[#allocation5 + $0x2b4] sm:$0xf0] }
  0xad   : > { %1654 = vmatpush.bf16.msra.mxu0 %v2717_v11  ;;  %v3479_v49 = vld [vmem:[#allocation5 + $0x524] sm:$0xf]  ;;  %v3050_v51 = vld [vmem:[#allocation5 + $0x530] sm:$0xf0]  ;;  %v2925_v59 = vor.u32 %v3447_v46, %v2922_v47  ;;  %v2864_v40 = vld [vmem:[#allocation5 + $0x3a8] sm:$0xf] }
  0xae   : > { %1668 = vmatpush.bf16.msra.mxu1 %v2845_v12  ;;  %v3379_v56 = vld [vmem:[#allocation5 + $0x204] sm:$0xf]  ;;  %v2650_v57 = vld [vmem:[#allocation5 + $0x210] sm:$0xf0]  ;;  %v3053_v3 = vor.u32 %v3479_v49, %v3050_v51  ;;  %v2608_v44 = vld [vmem:[#allocation5 + $0x1a8] sm:$0xf] }
  0xaf   : > { %1695 = vmatpush.bf16.msrb.mxu2 %v3117_v10  ;;  %1682 = vmatpush.bf16.msra.mxu3 %v2973_v16  ;;  %v3411_v58 = vld [vmem:[#allocation5 + $0x304] sm:$0xf]  ;;  %v2778_v61 = vld [vmem:[#allocation5 + $0x310] sm:$0xf0]  ;;  %v2653_v7 = vor.u32 %v3379_v56, %v2650_v57  ;;  %v3370_v45 = vld [vmem:[#allocation5 + $0x1b4] sm:$0xf0] }
  0xb0   : > { %v3443_v62 = vld [vmem:[#allocation5 + $0x404] sm:$0xf]  ;;  %v2906_v63 = vld [vmem:[#allocation5 + $0x410] sm:$0xf0]  ;;  %v2781_v9 = vor.u32 %v3411_v58, %v2778_v61  ;;  %v2464_v47 = vld [vmem:[#allocation5 + $0x88] sm:$0xf] }
  0xb1   : > { %1655 = vmatpush.bf16.msra.mxu0 %v2701_v23  ;;  %v3507_v2 = vld [vmem:[#allocation5 + $0x604] sm:$0xf]  ;;  %v3162_v4 = vld [vmem:[#allocation5 + $0x610] sm:$0xf0]  ;;  %v2909_v12 = vor.u32 %v3443_v62, %v2906_v63  ;;  %v2897_v23 = vor.u32 %v3442_v15, %v2896_v14  ;;  %v2720_v51 = vld [vmem:[#allocation5 + $0x288] sm:$0xf] }
  0xb2   : > { %1669 = vmatpush.bf16.msra.mxu1 %v2829_v24  ;;  %v3475_v10 = vld [vmem:[#allocation5 + $0x504] sm:$0xf]  ;;  %v3034_v11 = vld [vmem:[#allocation5 + $0x510] sm:$0xf0]  ;;  %v3165_v16 = vor.u32 %v3507_v2, %v3162_v4  ;;  %v2752_v24 = vld [vmem:[#allocation5 + $0x2c8] sm:$0xf] }
  0xb3   : > { %1696 = vmatpush.bf16.msrb.mxu2 %v3101_v22  ;;  %1683 = vmatpush.bf16.msra.mxu3 %v2957_v28  ;;  %v3037_v20 = vor.u32 %v3475_v10, %v3034_v11  ;;  %v3342_v22 = vld [vmem:[#allocation5 + $0xd4] sm:$0xf0]  ;;  %v2753_v32 = vor.u32 %v3406_v25, %v2752_v24  ;;  %v2848_v56 = vld [vmem:[#allocation5 + $0x388] sm:$0xf] }
  0xb4   : > { %v3438_v28 = vld [vmem:[#allocation5 + $0x3d4] sm:$0xf0]  ;;  %v2497_v29 = vor.u32 %v3342_v22, %v2496_v21  ;;  %v2448_v63 = vld [vmem:[#allocation5 + $0x68] sm:$0xf] }
  0xb5   : > { %1656 = vmatpush.bf16.msra.mxu0 %v2685_v35  ;;  %v2881_v35 = vor.u32 %v3438_v28, %v2880_v27  ;;  %v3430_v57 = vld [vmem:[#allocation5 + $0x394] sm:$0xf0]  ;;  %v2704_v2 = vld [vmem:[#allocation5 + $0x268] sm:$0xf] }
  0xb6   : > { %1670 = vmatpush.bf16.msra.mxu1 %v2813_v36  ;;  %v2736_v36 = vld [vmem:[#allocation5 + $0x2a8] sm:$0xf]  ;;  %v3366_v61 = vld [vmem:[#allocation5 + $0x194] sm:$0xf0]  ;;  %v2849_v1 = vor.u32 %v3430_v57, %v2848_v56  ;;  %v3344_v56 = vld [vmem:[#allocation5 + $0xec] sm:$0xf] }
  0xb7   : > { %1697 = vmatpush.bf16.msrb.mxu2 %v3085_v34  ;;  %1684 = vmatpush.bf16.msra.mxu3 %v2941_v41  ;;  %v3338_v34 = vld [vmem:[#allocation5 + $0xb4] sm:$0xf0]  ;;  %v2737_v46 = vor.u32 %v3402_v38, %v2736_v36  ;;  %v2832_v5 = vld [vmem:[#allocation5 + $0x368] sm:$0xf]  ;;  %v2514_v57 = vld [vmem:[#allocation5 + $0xf8] sm:$0xf0] }
  0xb8   : > { %v3434_v41 = vld [vmem:[#allocation5 + $0x3b4] sm:$0xf0]  ;;  %v2481_v43 = vor.u32 %v3338_v34, %v2480_v33  ;;  %v2688_v15 = vld [vmem:[#allocation5 + $0x248] sm:$0xf] }
  0xb9   : > { %1657 = vmatpush.bf16.msra.mxu0 %v2669_v52  ;;  %v2865_v49 = vor.u32 %v3434_v41, %v2864_v40  ;;  %v3398_v52 = vld [vmem:[#allocation5 + $0x294] sm:$0xf0]  ;;  %v2816_v18 = vld [vmem:[#allocation5 + $0x348] sm:$0xf] }
  0xba   : > { %1671 = vmatpush.bf16.msra.mxu1 %v2797_v53  ;;  %v2609_v53 = vor.u32 %v3370_v45, %v2608_v44  ;;  %v2721_v62 = vor.u32 %v3398_v52, %v2720_v51  ;;  %v3330_v0 = vld [vmem:[#allocation5 + $0x74] sm:$0xf0]  ;;  %v2560_v21 = vld [vmem:[#allocation5 + $0x148] sm:$0xf] }
  0xbb   : > { %1698 = vmatpush.bf16.msrb.mxu2 %v3069_v48  ;;  %1685 = vmatpush.bf16.msra.mxu3 %v2925_v59  ;;  %v3334_v48 = vld [vmem:[#allocation5 + $0x94] sm:$0xf0]  ;;  %v2592_v59 = vld [vmem:[#allocation5 + $0x188] sm:$0xf] }
  0xbc   : > { %v2465_v58 = vor.u32 %v3334_v48, %v2464_v47  ;;  %v2593_v4 = vor.u32 %v3366_v61, %v2592_v59  ;;  %v3426_v6 = vld [vmem:[#allocation5 + $0x374] sm:$0xf0]  ;;  %v2416_v24 = vld [vmem:[#allocation5 + $0x28] sm:$0xf] }
  0xbd   : > { %1658 = vmatpush.bf16.msra.mxu0 %v2653_v7  ;;  %v2449_v7 = vor.u32 %v3330_v0, %v2448_v63  ;;  %v3362_v10 = vld [vmem:[#allocation5 + $0x174] sm:$0xf0]  ;;  %v2833_v14 = vor.u32 %v3426_v6, %v2832_v5  ;;  %v2672_v27 = vld [vmem:[#allocation5 + $0x228] sm:$0xf]  ;;  %v2517_v6 = vor.u32 %v3344_v56, %v2514_v57 }
  0xbe   : > { %1672 = vmatpush.bf16.msra.mxu1 %v2781_v9  ;;  %v2576_v9 = vld [vmem:[#allocation5 + $0x168] sm:$0xf]  ;;  %v3358_v22 = vld [vmem:[#allocation5 + $0x154] sm:$0xf0] }
  0xbf   : > { %1699 = vmatpush.bf16.msrb.mxu2 %v3053_v3  ;;  %1686 = vmatpush.bf16.msra.mxu3 %v2909_v12  ;;  %v3394_v3 = vld [vmem:[#allocation5 + $0x274] sm:$0xf0]  ;;  %v2432_v12 = vld [vmem:[#allocation5 + $0x48] sm:$0xf]  ;;  %v2577_v17 = vor.u32 %v3362_v10, %v2576_v9  ;;  %v3340_v9 = vld [vmem:[#allocation5 + $0xcc] sm:$0xf] }
  0xc0   : > { %1659 = vmatmul.bf16.vlgmr.msra.gmra.mxu0 %v4046_v54  ;;  %v2705_v11 = vor.u32 %v3394_v3, %v2704_v2  ;;  %v3322_v25 = vld [vmem:[#allocation5 + $0x34] sm:$0xf0]  ;;  %v2800_v30 = vld [vmem:[#allocation5 + $0x328] sm:$0xf]  ;;  %v3376_v3 = vld [vmem:[#allocation5 + $0x1ec] sm:$0xf] }
  0xc1   : > { %1749 = vmatpush.bf16.msrb.mxu0 %v2769_v19  ;;  %1673 = vmatmul.bf16.vlgmr.msra.gmra.mxu1 %v4050_v60  ;;  %v3422_v19 = vld [vmem:[#allocation5 + $0x354] sm:$0xf0]  ;;  %v2544_v33 = vld [vmem:[#allocation5 + $0x128] sm:$0xf]  ;;  %v2498_v10 = vld [vmem:[#allocation5 + $0xd8] sm:$0xf0] }
  0xc2   : > { %1721 = vmatpush.bf16.msrb.mxu1 %v2513_v13  ;;  %1687 = vmatmul.bf16.vlgmr.msra.gmra.mxu3 %v4070_v37  ;;  %v3326_v13 = vld [vmem:[#allocation5 + $0x54] sm:$0xf0]  ;;  %v2656_v44 = vld [vmem:[#allocation5 + $0x208] sm:$0xf] }
  0xc3   : > { %1714 = vmatpush.bf16.msrb.mxu3 %v3165_v16  ;;  %1700 = vmatpush.bf16.msrb.mxu2 %v3037_v20  ;;  %v3390_v16 = vld [vmem:[#allocation5 + $0x254] sm:$0xf0]  ;;  %v2433_v20 = vor.u32 %v3326_v13, %v2432_v12  ;;  %v3152_v61 = vld [vmem:[#allocation5 + $0x5e8] sm:$0xf] }
  0xc4   : > { %v3386_v28 = vld [vmem:[#allocation5 + $0x234] sm:$0xf0]  ;;  %v3008_v63 = vld [vmem:[#allocation5 + $0x4c8] sm:$0xf] }
  0xc5   : > { %1750 = vmatpush.bf16.msrb.mxu0 %v2753_v32  ;;  %v3418_v31 = vld [vmem:[#allocation5 + $0x334] sm:$0xf0]  ;;  %v2417_v32 = vor.u32 %v3322_v25, %v2416_v24  ;;  %v2673_v36 = vor.u32 %v3386_v28, %v2672_v27  ;;  %v3136_v13 = vld [vmem:[#allocation5 + $0x5c8] sm:$0xf] }
  0xc6   : > { %1722 = vmatpush.bf16.msrb.mxu1 %v2497_v29  ;;  %1701 = vmatmul.bf16.vlgmr.msrb.gmra.mxu2 %v4072_v42  ;;  %v2561_v29 = vor.u32 %v3358_v22, %v2560_v21  ;;  %v3354_v34 = vld [vmem:[#allocation5 + $0x134] sm:$0xf0]  ;;  %v2801_v41 = vor.u32 %v3418_v31, %v2800_v30  ;;  %v3336_v21 = vld [vmem:[#allocation5 + $0xac] sm:$0xf]  ;;  %v2482_v22 = vld [vmem:[#allocation5 + $0xb8] sm:$0xf0] }
  0xc7   : > { %1763 = vmatpush.bf16.msra.mxu2 %v2897_v23  ;;  %1735 = vmatpush.bf16.msra.mxu3 %v2641_v26  ;;  %v2689_v23 = vor.u32 %v3390_v16, %v2688_v15  ;;  %v2817_v26 = vor.u32 %v3422_v19, %v2816_v18  ;;  %v3318_v38 = vld [vmem:[#allocation5 + $0x14] sm:$0xf0]  ;;  %v2545_v47 = vor.u32 %v3354_v34, %v2544_v33  ;;  %v2992_v15 = vld [vmem:[#allocation5 + $0x4a8] sm:$0xf]  ;;  %v2626_v18 = vld [vmem:[#allocation5 + $0x1d8] sm:$0xf0] }
  0xc8   : > { %v3474_v40 = vld [vmem:[#allocation5 + $0x4f4] sm:$0xf0]  ;;  %v2501_v19 = vor.u32 %v3340_v9, %v2498_v10  ;;  %v3120_v25 = vld [vmem:[#allocation5 + $0x5a8] sm:$0xf]  ;;  %v2610_v30 = vld [vmem:[#allocation5 + $0x1b8] sm:$0xf0]  ;;  %v2485_v31 = vor.u32 %v3336_v21, %v2482_v22 }
  0xc9   : > { %1751 = vmatpush.bf16.msrb.mxu0 %v2737_v46  ;;  %v3382_v45 = vld [vmem:[#allocation5 + $0x214] sm:$0xf0]  ;;  %v2784_v46 = vld [vmem:[#allocation5 + $0x308] sm:$0xf]  ;;  %v3332_v33 = vld [vmem:[#allocation5 + $0x8c] sm:$0xf] }
  0xca   : > { %1723 = vmatpush.bf16.msrb.mxu1 %v2481_v43  ;;  %v2528_v43 = vld [vmem:[#allocation5 + $0x108] sm:$0xf]  ;;  %v3414_v48 = vld [vmem:[#allocation5 + $0x314] sm:$0xf0]  ;;  %v2657_v59 = vor.u32 %v3382_v45, %v2656_v44  ;;  %v2466_v34 = vld [vmem:[#allocation5 + $0x98] sm:$0xf0] }
  0xcb   : > { %1764 = vmatpush.bf16.msra.mxu2 %v2881_v35  ;;  %1736 = vmatpush.bf16.msra.mxu3 %v2625_v39  ;;  %v2400_v35 = vld [vmem:[#allocation5 + $0x8] sm:$0xf]  ;;  %v3510_v51 = vld [vmem:[#allocation5 + $0x614] sm:$0xf0]  ;;  %v2785_v0 = vor.u32 %v3414_v48, %v2784_v46  ;;  %v2594_v44 = vld [vmem:[#allocation5 + $0x198] sm:$0xf0]  ;;  %v2469_v45 = vor.u32 %v3332_v33, %v2466_v34 }
  0xcc   : > { %v3024_v39 = vld [vmem:[#allocation5 + $0x4e8] sm:$0xf]  ;;  %v2401_v52 = vor.u32 %v3318_v38, %v2400_v35  ;;  %v3466_v16 = vld [vmem:[#allocation5 + $0x4b4] sm:$0xf0]  ;;  %v2450_v48 = vld [vmem:[#allocation5 + $0x78] sm:$0xf0] }
  0xcd   : > { %1752 = vmatpush.bf16.msrb.mxu0 %v2721_v62  ;;  %v3506_v62 = vld [vmem:[#allocation5 + $0x5f4] sm:$0xf0]  ;;  %v2976_v27 = vld [vmem:[#allocation5 + $0x488] sm:$0xf]  ;;  %v2562_v9 = vld [vmem:[#allocation5 + $0x158] sm:$0xf0] }
  0xce   : > { %1724 = vmatpush.bf16.msrb.mxu1 %v2465_v58  ;;  %v3025_v58 = vor.u32 %v3474_v40, %v3024_v39  ;;  %v3462_v28 = vld [vmem:[#allocation5 + $0x494] sm:$0xf0]  ;;  %v3104_v38 = vld [vmem:[#allocation5 + $0x588] sm:$0xf]  ;;  %v2546_v21 = vld [vmem:[#allocation5 + $0x138] sm:$0xf0] }
  0xcf   : > { %1765 = vmatpush.bf16.msra.mxu2 %v2865_v49  ;;  %1737 = vmatpush.bf16.msra.mxu3 %v2609_v53  ;;  %v3168_v49 = vld [vmem:[#allocation5 + $0x608] sm:$0xf]  ;;  %v3350_v53 = vld [vmem:[#allocation5 + $0x114] sm:$0xf0]  ;;  %v2977_v35 = vor.u32 %v3462_v28, %v2976_v27  ;;  %v3316_v27 = vld [vmem:[#allocation5 + $0xc] sm:$0xf] }
  0xd0   : > { %v3169_v2 = vor.u32 %v3510_v51, %v3168_v49  ;;  %v2529_v5 = vor.u32 %v3350_v53, %v2528_v43  ;;  %v3494_v39 = vld [vmem:[#allocation5 + $0x594] sm:$0xf0]  ;;  %v2960_v40 = vld [vmem:[#allocation5 + $0x468] sm:$0xf]  ;;  %v3364_v43 = vld [vmem:[#allocation5 + $0x18c] sm:$0xf] }
  0xd1   : > { %1753 = vmatpush.bf16.msrb.mxu0 %v2705_v11  ;;  %v3105_v46 = vor.u32 %v3494_v39, %v3104_v38  ;;  %v2597_v51 = vor.u32 %v3364_v43, %v2594_v44  ;;  %v3490_v53 = vld [vmem:[#allocation5 + $0x574] sm:$0xf0]  ;;  %v2944_v56 = vld [vmem:[#allocation5 + $0x448] sm:$0xf]  ;;  %v2402_v28 = vld [vmem:[#allocation5 + $0x18] sm:$0xf0] }
  0xd2   : > { %1725 = vmatpush.bf16.msrb.mxu1 %v2449_v7  ;;  %3175 = vmatmul.msk.bf16.vlgmr.msrb.gmra.mxu3 %vm1521_vm0, %v4062_v50  ;;  %v3153_v7 = vor.u32 %v3506_v62, %v3152_v61  ;;  %v3454_v57 = vld [vmem:[#allocation5 + $0x454] sm:$0xf0]  ;;  %v2898_v33 = vld [vmem:[#allocation5 + $0x3f8] sm:$0xf0]  ;;  %v3404_v38 = vld [vmem:[#allocation5 + $0x2cc] sm:$0xf]  ;;  %v2405_v39 = vor.u32 %v3316_v27, %v2402_v28 }
  0xd3   : > { %1766 = vmatpush.bf16.msra.mxu2 %v2849_v1  ;;  %1738 = vmatpush.bf16.msra.mxu3 %v2593_v4  ;;  %v3470_v1 = vld [vmem:[#allocation5 + $0x4d4] sm:$0xf0]  ;;  %v2642_v4 = vld [vmem:[#allocation5 + $0x1f8] sm:$0xf0] }
  0xd4   : > { %v3009_v11 = vor.u32 %v3470_v1, %v3008_v63  ;;  %v2645_v12 = vor.u32 %v3376_v3, %v2642_v4  ;;  %v3324_v63 = vld [vmem:[#allocation5 + $0x4c] sm:$0xf]  ;;  %v2945_v1 = vor.u32 %v3454_v57, %v2944_v56  ;;  %v3072_v3 = vld [vmem:[#allocation5 + $0x548] sm:$0xf]  ;;  %v3486_v4 = vld [vmem:[#allocation5 + $0x554] sm:$0xf0] }
  0xd5   : > { %1754 = vmatpush.bf16.msrb.mxu0 %v2689_v23  ;;  %v2993_v23 = vor.u32 %v3466_v16, %v2992_v15  ;;  %v3056_v16 = vld [vmem:[#allocation5 + $0x528] sm:$0xf]  ;;  %v2530_v43 = vld [vmem:[#allocation5 + $0x118] sm:$0xf0]  ;;  %v3468_v56 = vld [vmem:[#allocation5 + $0x4cc] sm:$0xf] }
  0xd6   : > { %1726 = vmatpush.bf16.msrb.mxu1 %v2433_v20  ;;  %v3010_v57 = vld [vmem:[#allocation5 + $0x4d8] sm:$0xf0] }
  0xd7   : > { %1767 = vmatpush.bf16.msra.mxu2 %v2833_v14  ;;  %1739 = vmatpush.bf16.msra.mxu3 %v2577_v17  ;;  %v3502_v14 = vld [vmem:[#allocation5 + $0x5d4] sm:$0xf0]  ;;  %v3372_v17 = vld [vmem:[#allocation5 + $0x1cc] sm:$0xf]  ;;  %v2834_v28 = vld [vmem:[#allocation5 + $0x378] sm:$0xf0] }
  0xd8   : > { %v3137_v20 = vor.u32 %v3502_v14, %v3136_v13  ;;  %v2629_v24 = vor.u32 %v3372_v17, %v2626_v18  ;;  %v2418_v13 = vld [vmem:[#allocation5 + $0x38] sm:$0xf0]  ;;  %v3482_v17 = vld [vmem:[#allocation5 + $0x534] sm:$0xf0]  ;;  %v2912_v18 = vld [vmem:[#allocation5 + $0x408] sm:$0xf] }
  0xd9   : > { %1755 = vmatpush.bf16.msrb.mxu0 %v2673_v36 }
  0xda   : > { %1727 = vmatpush.bf16.msrb.mxu1 %v2417_v32 }
  0xdb   : > { %1768 = vmatpush.bf16.msra.mxu2 %v2817_v26  ;;  %1740 = vmatpush.bf16.msra.mxu3 %v2561_v29  ;;  %v3498_v26 = vld [vmem:[#allocation5 + $0x5b4] sm:$0xf0]  ;;  %v3368_v29 = vld [vmem:[#allocation5 + $0x1ac] sm:$0xf] }
  0xdc   : > { %v3121_v32 = vor.u32 %v3498_v26, %v3120_v25  ;;  %v2613_v36 = vor.u32 %v3368_v29, %v2610_v30  ;;  %v3057_v25 = vor.u32 %v3482_v17, %v3056_v16  ;;  %v3040_v26 = vld [vmem:[#allocation5 + $0x508] sm:$0xf]  ;;  %v2850_v17 = vld [vmem:[#allocation5 + $0x398] sm:$0xf0] }
  0xdd   : > { %1756 = vmatpush.bf16.msrb.mxu0 %v2657_v59  ;;  %v2578_v59 = vld [vmem:[#allocation5 + $0x178] sm:$0xf0] }
  0xde   : > { %1728 = vmatpush.bf16.msrb.mxu1 %v2401_v52  ;;  %v3088_v52 = vld [vmem:[#allocation5 + $0x568] sm:$0xf] }
  0xdf   : > { %1769 = vmatpush.bf16.msra.mxu2 %v2801_v41  ;;  %1741 = vmatpush.bf16.msra.mxu3 %v2545_v47  ;;  %v3458_v41 = vld [vmem:[#allocation5 + $0x474] sm:$0xf0]  ;;  %v3328_v47 = vld [vmem:[#allocation5 + $0x6c] sm:$0xf]  ;;  %v3089_v62 = vor.u32 %v3490_v53, %v3088_v52  ;;  %v2882_v53 = vld [vmem:[#allocation5 + $0x3d8] sm:$0xf0] }
  0xe0   : > { %1757 = vmatmul.bf16.vlgmr.msrb.gmra.mxu0 %v4046_v54  ;;  %v2961_v49 = vor.u32 %v3458_v41, %v2960_v40  ;;  %v2453_v61 = vor.u32 %v3328_v47, %v2450_v48  ;;  %v2754_v40 = vld [vmem:[#allocation5 + $0x2d8] sm:$0xf0]  ;;  %v3348_v41 = vld [vmem:[#allocation5 + $0x10c] sm:$0xf] }
  0xe1   : > { %1812 = vmatpush.bf16.msra.mxu0 %v3169_v2  ;;  %1729 = vmatmul.bf16.vlgmr.msrb.gmra.mxu1 %v4048_v55  ;;  %v2533_v52 = vor.u32 %v3348_v41, %v2530_v43  ;;  %v3452_v41 = vld [vmem:[#allocation5 + $0x44c] sm:$0xf]  ;;  %v2946_v43 = vld [vmem:[#allocation5 + $0x458] sm:$0xf0] }
  0xe2   : > { %1777 = vmatpush.bf16.msra.mxu1 %v3025_v58  ;;  %v3360_v58 = vld [vmem:[#allocation5 + $0x16c] sm:$0xf] }
  0xe3   : > { %1770 = vmatpush.bf16.msra.mxu2 %v2785_v0  ;;  %1742 = vmatpush.bf16.msra.mxu3 %v2529_v5  ;;  %v2434_v0 = vld [vmem:[#allocation5 + $0x58] sm:$0xf0]  ;;  %v2581_v2 = vor.u32 %v3360_v58, %v2578_v59  ;;  %v2928_v5 = vld [vmem:[#allocation5 + $0x428] sm:$0xf]  ;;  %v3400_v59 = vld [vmem:[#allocation5 + $0x2ac] sm:$0xf] }
  0xe4   : > { %v2437_v10 = vor.u32 %v3324_v63, %v2434_v0  ;;  %v3138_v63 = vld [vmem:[#allocation5 + $0x5d8] sm:$0xf0] }
  0xe5   : > { %1833 = vmatpush.bf16.msrb.mxu0 %v2645_v12  ;;  %v3320_v12 = vld [vmem:[#allocation5 + $0x2c] sm:$0xf] }
  0xe6   : > { %1778 = vmatpush.bf16.msra.mxu1 %v3009_v11  ;;  %1743 = vmatmul.bf16.vlgmr.msra.gmra.mxu3 %v4056_v8  ;;  %v3073_v11 = vor.u32 %v3486_v4, %v3072_v3  ;;  %v2421_v22 = vor.u32 %v3320_v12, %v2418_v13  ;;  %v2866_v4 = vld [vmem:[#allocation5 + $0x3b8] sm:$0xf0] }
  0xe7   : > { %1819 = vmatpush.bf16.msrb.mxu2 %v2517_v6  ;;  %1791 = vmatpush.bf16.msrb.mxu3 %v3153_v7  ;;  %v3450_v6 = vld [vmem:[#allocation5 + $0x434] sm:$0xf0]  ;;  %v3356_v7 = vld [vmem:[#allocation5 + $0x14c] sm:$0xf]  ;;  %v3122_v12 = vld [vmem:[#allocation5 + $0x5b8] sm:$0xf0] }
  0xe8   : > { %1771 = vmatmul.bf16.vlgmr.msra.gmra.mxu2 %v4050_v60  ;;  %v2929_v14 = vor.u32 %v3450_v6, %v2928_v5  ;;  %v2565_v15 = vor.u32 %v3356_v7, %v2562_v9  ;;  %v3464_v5 = vld [vmem:[#allocation5 + $0x4ac] sm:$0xf]  ;;  %v2994_v6 = vld [vmem:[#allocation5 + $0x4b8] sm:$0xf0] }
  0xe9   : > { %1834 = vmatpush.bf16.msrb.mxu0 %v2629_v24  ;;  %v2770_v24 = vld [vmem:[#allocation5 + $0x2f8] sm:$0xf0]  ;;  %v3396_v9 = vld [vmem:[#allocation5 + $0x28c] sm:$0xf] }
  0xea   : > { %1779 = vmatpush.bf16.msra.mxu1 %v2993_v23  ;;  %v3408_v23 = vld [vmem:[#allocation5 + $0x2ec] sm:$0xf] }
  0xeb   : > { %1820 = vmatpush.bf16.msrb.mxu2 %v2501_v19  ;;  %1792 = vmatpush.bf16.msrb.mxu3 %v3137_v20  ;;  %v3446_v19 = vld [vmem:[#allocation5 + $0x414] sm:$0xf0]  ;;  %v3352_v20 = vld [vmem:[#allocation5 + $0x12c] sm:$0xf]  ;;  %v2773_v34 = vor.u32 %v3408_v23, %v2770_v24 }
  0xec   : > { %v2913_v29 = vor.u32 %v3446_v19, %v2912_v18  ;;  %v2549_v30 = vor.u32 %v3352_v20, %v2546_v21  ;;  %v3460_v18 = vld [vmem:[#allocation5 + $0x48c] sm:$0xf]  ;;  %v2978_v19 = vld [vmem:[#allocation5 + $0x498] sm:$0xf0] }
  0xed   : > { %1835 = vmatpush.bf16.msrb.mxu0 %v2613_v36  ;;  %v3026_v36 = vld [vmem:[#allocation5 + $0x4f8] sm:$0xf0]  ;;  %v3392_v21 = vld [vmem:[#allocation5 + $0x26c] sm:$0xf] }
  0xee   : > { %1780 = vmatpush.bf16.msra.mxu1 %v2977_v35  ;;  %v3472_v35 = vld [vmem:[#allocation5 + $0x4ec] sm:$0xf] }
  0xef   : > { %1821 = vmatpush.bf16.msrb.mxu2 %v2485_v31  ;;  %1793 = vmatpush.bf16.msrb.mxu3 %v3121_v32  ;;  %v3478_v31 = vld [vmem:[#allocation5 + $0x514] sm:$0xf0]  ;;  %v3440_v32 = vld [vmem:[#allocation5 + $0x3ec] sm:$0xf]  ;;  %v3029_v48 = vor.u32 %v3472_v35, %v3026_v36 }
  0xf0   : > { %3176 = vmatmul.msk.bf16.vlgmr.msra.gmra.mxu0 %vm1521_vm0, %v4062_v50  ;;  %v3041_v44 = vor.u32 %v3478_v31, %v3040_v26  ;;  %v2901_v47 = vor.u32 %v3440_v32, %v2898_v33  ;;  %v3492_v23 = vld [vmem:[#allocation5 + $0x58c] sm:$0xf] }
  0xf1   : > { %1836 = vmatpush.bf16.msrb.mxu0 %v2597_v51  ;;  %v2757_v51 = vor.u32 %v3404_v38, %v2754_v40  ;;  %v3424_v26 = vld [vmem:[#allocation5 + $0x36c] sm:$0xf]  ;;  %v2818_v40 = vld [vmem:[#allocation5 + $0x358] sm:$0xf0] }
  0xf2   : > { %1781 = vmatpush.bf16.msra.mxu1 %v2961_v49  ;;  %v3436_v49 = vld [vmem:[#allocation5 + $0x3cc] sm:$0xf]  ;;  %v2837_v35 = vor.u32 %v3424_v26, %v2834_v28  ;;  %v3517_v26 = vld [vmem:[#allocation8 + $0x30] sm:$0xff] }
  0xf3   : > { %1822 = vmatpush.bf16.msrb.mxu2 %v2469_v45  ;;  %1794 = vmatpush.bf16.msrb.mxu3 %v3105_v46  ;;  %v3504_v45 = vld [vmem:[#allocation5 + $0x5ec] sm:$0xf]  ;;  %v3154_v46 = vld [vmem:[#allocation5 + $0x5f8] sm:$0xf0]  ;;  %v2885_v0 = vor.u32 %v3436_v49, %v2882_v53 }
  0xf4   : > { %v3157_v58 = vor.u32 %v3504_v45, %v3154_v46  ;;  %v3388_v32 = vld [vmem:[#allocation5 + $0x24c] sm:$0xf]  ;;  %v2674_v46 = vld [vmem:[#allocation5 + $0x238] sm:$0xf0] }
  0xf5   : > { %1837 = vmatpush.bf16.msrb.mxu0 %v2581_v2  ;;  %v3432_v2 = vld [vmem:[#allocation5 + $0x3ac] sm:$0xf] }
  0xf6   : > { %1782 = vmatpush.bf16.msra.mxu1 %v2945_v1  ;;  %v3013_v1 = vor.u32 %v3468_v56, %v3010_v57  ;;  %v2869_v13 = vor.u32 %v3432_v2, %v2866_v4  ;;  %v3488_v33 = vld [vmem:[#allocation5 + $0x56c] sm:$0xf]  ;;  %v2802_v57 = vld [vmem:[#allocation5 + $0x338] sm:$0xf0] }
  0xf7   : > { %1823 = vmatpush.bf16.msrb.mxu2 %v2453_v61  ;;  %1795 = vmatpush.bf16.msrb.mxu3 %v3089_v62  ;;  %v2738_v61 = vld [vmem:[#allocation5 + $0x2b8] sm:$0xf0]  ;;  %v3500_v62 = vld [vmem:[#allocation5 + $0x5cc] sm:$0xf] }
  0xf8   : > { %v2741_v3 = vor.u32 %v3400_v59, %v2738_v61  ;;  %v3141_v7 = vor.u32 %v3500_v62, %v3138_v63  ;;  %v3420_v38 = vld [vmem:[#allocation5 + $0x34c] sm:$0xf]  ;;  %v2930_v59 = vld [vmem:[#allocation5 + $0x438] sm:$0xf0] }
  0xf9   : > { %1838 = vmatpush.bf16.msrb.mxu0 %v2565_v15  ;;  %v3428_v15 = vld [vmem:[#allocation5 + $0x38c] sm:$0xf]  ;;  %v2821_v49 = vor.u32 %v3420_v38, %v2818_v40  ;;  %v3058_v2 = vld [vmem:[#allocation5 + $0x538] sm:$0xf0] }
  0xfa   : > { %1783 = vmatpush.bf16.msra.mxu1 %v2929_v14  ;;  %v2997_v14 = vor.u32 %v3464_v5, %v2994_v6  ;;  %v2853_v24 = vor.u32 %v3428_v15, %v2850_v17  ;;  %v3384_v45 = vld [vmem:[#allocation5 + $0x22c] sm:$0xf]  ;;  %v3170_v4 = vld [vmem:[#allocation5 + $0x618] sm:$0xf0] }
  0xfb   : > { %1824 = vmatpush.bf16.msrb.mxu2 %v2437_v10  ;;  %1796 = vmatpush.bf16.msrb.mxu3 %v3073_v11  ;;  %v2722_v10 = vld [vmem:[#allocation5 + $0x298] sm:$0xf0]  ;;  %v3496_v11 = vld [vmem:[#allocation5 + $0x5ac] sm:$0xf]  ;;  %v2677_v56 = vor.u32 %v3384_v45, %v2674_v46  ;;  %v3513_v46 = vld [vmem:[#allocation8 + $0x10] sm:$0xff] }
  0xfc   : > { %v2725_v16 = vor.u32 %v3396_v9, %v2722_v10  ;;  %v3125_v20 = vor.u32 %v3496_v11, %v3122_v12  ;;  %v3380_v63 = vld [vmem:[#allocation5 + $0x20c] sm:$0xf]  ;;  %v2786_v11 = vld [vmem:[#allocation5 + $0x318] sm:$0xf0] }
  0xfd   : > { %1839 = vmatpush.bf16.msrb.mxu0 %v2549_v30  ;;  %v2962_v30 = vld [vmem:[#allocation5 + $0x478] sm:$0xf0]  ;;  %v3412_v10 = vld [vmem:[#allocation5 + $0x30c] sm:$0xf] }
  0xfe   : > { %1784 = vmatpush.bf16.msra.mxu1 %v2913_v29  ;;  %v3456_v29 = vld [vmem:[#allocation5 + $0x46c] sm:$0xf]  ;;  %v3514_v40 = vld [vmem:[#allocation8 + $0x18] sm:$0xff] }
  0xff   : > { %1825 = vmatpush.bf16.msrb.mxu2 %v2421_v22  ;;  %1797 = vmatpush.bf16.msrb.mxu3 %v3057_v25  ;;  %v2706_v22 = vld [vmem:[#allocation5 + $0x278] sm:$0xf0]  ;;  %v2981_v25 = vor.u32 %v3460_v18, %v2978_v19  ;;  %v2965_v36 = vor.u32 %v3456_v29, %v2962_v30  ;;  %v1534_v53 = vpop.f32.mrf.mxu0  ;;  %v3476_v17 = vld [vmem:[#allocation5 + $0x50c] sm:$0xf]  ;;  %v2789_v19 = vor.u32 %v3412_v10, %v2786_v11 }
 0x100   : > { %v2709_v27 = vor.u32 %v3392_v21, %v2706_v22  ;;  %v3042_v18 = vld [vmem:[#allocation5 + $0x518] sm:$0xf0]  ;;  %v3516_v30 = vld [vmem:[#allocation8 + $0x28] sm:$0xff] }
 0x101   : > { %1785 = vmatmul.bf16.vlgmr.msra.gmra.mxu1 %v4070_v37  ;;  %1840 = vmatpush.bf16.msrb.mxu0 %v2533_v52  ;;  %v3416_v52 = vld [vmem:[#allocation5 + $0x32c] sm:$0xf]  ;;  %v1548_v61 = vpop.f32.mrf.mxu1  ;;  %v3518_v21 = vld [vmem:[#allocation8 + $0x38] sm:$0xff] }
 0x102   : > { %1847 = vmatpush.bf16.msrb.mxu1 %v2773_v34  ;;  %v3090_v34 = vld [vmem:[#allocation5 + $0x578] sm:$0xf0]  ;;  %v2805_v5 = vor.u32 %v3416_v52, %v2802_v57  ;;  %v3512_v52 = vld [vmem:[#allocation8 + $0x8] sm:$0xff] }
 0x103   : > { %1826 = vmatpush.bf16.msrb.mxu2 %v2405_v39  ;;  %1798 = vmatpush.bf16.msrb.mxu3 %v3041_v44  ;;  %v3093_v44 = vor.u32 %v3488_v33, %v3090_v34  ;;  %v3515_v33 = vld [vmem:[#allocation8 + $0x20] sm:$0xff] }
 0x104   : > { %1841 = vmatmul.bf16.vlgmr.msrb.gmra.mxu0 %v4056_v8  ;;  %v2690_v8 = vld [vmem:[#allocation5 + $0x258] sm:$0xf0] }
 0x105   : > { %1889 = vmatpush.bf16.msra.mxu0 %v3157_v58  ;;  %v2693_v39 = vor.u32 %v3388_v32, %v2690_v8  ;;  %v3448_v58 = vld [vmem:[#allocation5 + $0x42c] sm:$0xf] }
 0x106   : > { %1848 = vmatpush.bf16.msrb.mxu1 %v2757_v51  ;;  %1799 = vmatmul.bf16.vlgmr.msrb.gmra.mxu3 %v4072_v42  ;;  %v2949_v51 = vor.u32 %v3452_v41, %v2946_v43  ;;  %v2933_v6 = vor.u32 %v3448_v58, %v2930_v59  ;;  %v3525_v43 = vld [vmem:[#allocation8 + $0x70] sm:$0xff]  ;;  %v3511_v58 = vld [vmem:[#allocation8] sm:$0xff] }
 0x107   : > { %1861 = vmatpush.bf16.msra.mxu3 %v2901_v47  ;;  %1875 = vmatpush.bf16.msra.mxu2 %v3029_v48  ;;  %v3484_v47 = vld [vmem:[#allocation5 + $0x54c] sm:$0xf]  ;;  %v3074_v48 = vld [vmem:[#allocation5 + $0x558] sm:$0xf0] }
 0x108   : > { %1827 = vmatmul.bf16.vlgmr.msrb.gmra.mxu2 %v4048_v55  ;;  %v3106_v55 = vld [vmem:[#allocation5 + $0x598] sm:$0xf0]  ;;  %v3077_v62 = vor.u32 %v3484_v47, %v3074_v48  ;;  %v3524_v48 = vld [vmem:[#allocation8 + $0x68] sm:$0xff] }
 0x109   : > { %1890 = vmatpush.bf16.msra.mxu0 %v3141_v7  ;;  %v3109_v31 = vor.u32 %v3492_v23, %v3106_v55  ;;  %v1562_v7 = vpop.f32.mrf.mxu2  ;;  %v3045_v23 = vor.u32 %v3476_v17, %v3042_v18  ;;  %v1536_v55 = vpop.f32.mrf.mxu0 }
 0x10a   : > { %1849 = vmatpush.bf16.msrb.mxu1 %v2741_v3  ;;  %v3508_v3 = vld [vmem:[#allocation5 + $0x60c] sm:$0xf] }
 0x10b   : > { %1862 = vmatpush.bf16.msra.mxu3 %v2885_v0  ;;  %1876 = vmatpush.bf16.msra.mxu2 %v3013_v1  ;;  %v2658_v0 = vld [vmem:[#allocation5 + $0x218] sm:$0xf0]  ;;  %v3480_v1 = vld [vmem:[#allocation5 + $0x52c] sm:$0xf]  ;;  %v3173_v15 = vor.u32 %v3508_v3, %v3170_v4  ;;  %v3519_v4 = vld [vmem:[#allocation8 + $0x40] sm:$0xff] }
 0x10c   : > { %v2661_v9 = vor.u32 %v3380_v63, %v2658_v0  ;;  %v3061_v12 = vor.u32 %v3480_v1, %v3058_v2  ;;  %v3521_v0 = vld [vmem:[#allocation8 + $0x50] sm:$0xff]  ;;  %v3520_v1 = vld [vmem:[#allocation8 + $0x48] sm:$0xff] }
 0x10d   : > { %1891 = vmatpush.bf16.msra.mxu0 %v3125_v20 }
 0x10e   : > { %1850 = vmatpush.bf16.msrb.mxu1 %v2725_v16  ;;  %v4094_v16 = vld [vmem:[#allocation7] sm:$0xf] }
 0x10f   : > { %1863 = vmatpush.bf16.msra.mxu3 %v2869_v13  ;;  %1877 = vmatpush.bf16.msra.mxu2 %v2997_v14  ;;  %v3444_v13 = vld [vmem:[#allocation5 + $0x40c] sm:$0xf]  ;;  %v2914_v14 = vld [vmem:[#allocation5 + $0x418] sm:$0xf0]  ;;  %v533_v22 = vperm.slane %v4094_v16, 0 }
 0x110   : > { %v2917_v20 = vor.u32 %v3444_v13, %v2914_v14 }
 0x111   : > { %1892 = vmatpush.bf16.msra.mxu0 %v3109_v31  ;;  %v1537_v28 = vadd.f32 %v1536_v55, %v533_v22  ;;  %v1564_v29 = vpop.f32.mrf.mxu2  ;;  %v3533_v55 = vld [vmem:[#allocation8 + $0xb0] sm:$0xff] }
 0x112   : > { %1851 = vmatpush.bf16.msrb.mxu1 %v2709_v27  ;;  %v1535_v27 = vadd.f32 %v1534_v53, %v533_v22 }
 0x113   : > { %1864 = vmatpush.bf16.msra.mxu3 %v2853_v24  ;;  %1878 = vmatpush.bf16.msra.mxu2 %v2981_v25  ;;  %v1550_v24 = vpop.f32.mrf.mxu1  ;;  %v1576_v25 = vpop.f32.mrf.mxu3 }
 0x114   : > { %v1549_v31 = vadd.f32 %v1548_v61, %v1535_v27  ;;  %v1551_v32 = vadd.f32 %v1550_v24, %v1537_v28  ;;  %v3522_v61 = vld [vmem:[#allocation8 + $0x58] sm:$0xff] }
 0x115   : > { %1893 = vmatpush.bf16.msra.mxu0 %v3093_v44 }
 0x116   : > { %1852 = vmatpush.bf16.msrb.mxu1 %v2693_v39  ;;  %v1563_v34 = vadd.f32 %v1562_v7, %v1549_v31  ;;  %v3526_v39 = vld [vmem:[#allocation8 + $0x78] sm:$0xff]  ;;  %v534_v7 = vperm.slane %v4094_v16, 1 }
 0x117   : > { %1865 = vmatpush.bf16.msra.mxu3 %v2837_v35  ;;  %1879 = vmatpush.bf16.msra.mxu2 %v2965_v36  ;;  %v1565_v35 = vadd.f32 %v1564_v29, %v1551_v32 }
 0x119   : > { %1894 = vmatpush.bf16.msra.mxu0 %v3077_v62  ;;  %v1618_v38 = vpop.f32.mrf.mxu2 }
 0x11a   : > { %1853 = vmatpush.bf16.msrb.mxu1 %v2677_v56  ;;  %v3523_v56 = vld [vmem:[#allocation8 + $0x60] sm:$0xff] }
 0x11b   : > { %1866 = vmatpush.bf16.msra.mxu3 %v2821_v49  ;;  %1880 = vmatpush.bf16.msra.mxu2 %v2949_v51  ;;  %v1578_v36 = vpop.f32.mrf.mxu3 }
 0x11d   : > { %1895 = vmatpush.bf16.msra.mxu0 %v3061_v12 }
 0x11e   : > { %1854 = vmatpush.bf16.msrb.mxu1 %v2661_v9  ;;  %v1604_v8 = vpop.f32.mrf.mxu1 }
 0x11f   : > { %1867 = vmatpush.bf16.msra.mxu3 %v2805_v5  ;;  %1881 = vmatpush.bf16.msra.mxu2 %v2933_v6 }
 0x121   : > { %1855 = vmatmul.bf16.vlgmr.msrb.gmra.mxu1 %v4046_v54  ;;  %1896 = vmatpush.bf16.msra.mxu0 %v3045_v23  ;;  %v1590_v54 = vpop.f32.mrf.mxu0  ;;  %v1620_v51 = vpop.f32.mrf.mxu2 }
 0x122   : > { %1910 = vmatpush.bf16.msra.mxu1 %v3173_v15 }
 0x123   : > { %1868 = vmatpush.bf16.msra.mxu3 %v2789_v19  ;;  %1882 = vmatpush.bf16.msra.mxu2 %v2917_v20 }
 0x124   : > { %1897 = vmatmul.bf16.vlgmr.msra.gmra.mxu0 %v4072_v42 }
 0x126   : > { %1869 = vmatmul.bf16.vlgmr.msra.gmra.mxu3 %v4050_v60  ;;  %1883 = vmatmul.bf16.vlgmr.msra.gmra.mxu2 %v4070_v37  ;;  %v1577_v60 = vadd.f32 %v1576_v25, %v1563_v34  ;;  %v1579_v37 = vadd.f32 %v1578_v36, %v1565_v35  ;;  %v1606_v45 = vpop.f32.mrf.mxu1 }
 0x127   : > { %2189 = vmatpush.bf16.msrb.mxu3 %v3518_v21  ;;  %2203 = vmatpush.bf16.msrb.mxu1 %v3526_v39  ;;  %v3534_v21 = vld [vmem:[#allocation8 + $0xb8] sm:$0xff] }
 0x128   : > { %v1591_v42 = vadd.f32 %v1590_v54, %v1577_v60  ;;  %2217 = vmatpush.bf16.msrb.mxu2 %v3534_v21  ;;  %v3531_v54 = vld [vmem:[#allocation8 + $0xa0] sm:$0xff] }
 0x129   : > { %v1592_v41 = vpop.f32.mrf.mxu0  ;;  %v1646_v2 = vpop.f32.mrf.mxu2 }
 0x12a   : > { %v1593_v44 = vadd.f32 %v1592_v41, %v1579_v37  ;;  %v1605_v49 = vadd.f32 %v1604_v8, %v1591_v42  ;;  %v3528_v37 = vld [vmem:[#allocation8 + $0x88] sm:$0xff]  ;;  %v3527_v41 = vld [vmem:[#allocation8 + $0x80] sm:$0xff] }
 0x12b   : > { %2190 = vmatpush.bf16.msrb.mxu3 %v3517_v26  ;;  %2204 = vmatpush.bf16.msrb.mxu1 %v3525_v43 }
 0x12c   : > { %v1607_v47 = vadd.f32 %v1606_v45, %v1593_v44  ;;  %v1619_v57 = vadd.f32 %v1618_v38, %v1605_v49  ;;  %2218 = vmatpush.bf16.msrb.mxu2 %v3533_v55  ;;  %v3530_v38 = vld [vmem:[#allocation8 + $0x98] sm:$0xff]  ;;  %v535_v44 = vperm.slane %v4094_v16, 2 }
 0x12e   : > { %v1621_v53 = vadd.f32 %v1620_v51, %v1607_v47  ;;  %v1917_v62 = vmax.f32 %v1619_v57, 0.0 }
 0x12f   : > { %2191 = vmatpush.bf16.msrb.mxu3 %v3516_v30  ;;  %2205 = vmatpush.bf16.msrb.mxu1 %v3524_v48  ;;  %v3532_v30 = vld [vmem:[#allocation8 + $0xa8] sm:$0xff]  ;;  %v3541_v48 = vld [vmem:[#allocation8 + $0xf0] sm:$0xff] }
 0x130   : > { %v1921_v59 = vmax.f32 %v1621_v53, 0.0  ;;  %2219 = vmatpush.bf16.msrb.mxu2 %v3532_v30 }
 0x131   : > { %3177 = vmatmul.msk.bf16.vlgmr.msra.gmra.mxu1 %vm1521_vm0, %v4062_v50  ;;  %v1632_v50 = vpop.f32.mrf.mxu3  ;;  %v1648_v9 = vpop.f32.mrf.mxu2 }
 0x132   : > { %v1925_v63 = vpack.c.bf16 %v1921_v59, %v1917_v62  ;;  %v1633_v11 = vadd.f32 %v1632_v50, %v534_v7 }
 0x133   : > { %2192 = vmatpush.bf16.msrb.mxu3 %v3515_v33  ;;  %2206 = vmatpush.bf16.msrb.mxu1 %v3523_v56 }
 0x134   : > { %v1647_v14 = vadd.f32 %v1646_v2, %v1633_v11  ;;  %2220 = vmatpush.bf16.msrb.mxu2 %v3531_v54 }
 0x137   : > { %2193 = vmatpush.bf16.msrb.mxu3 %v3514_v40  ;;  %2207 = vmatpush.bf16.msrb.mxu1 %v3522_v61  ;;  %v3529_v40 = vld [vmem:[#allocation8 + $0x90] sm:$0xff]  ;;  %v3539_v61 = vld [vmem:[#allocation8 + $0xe0] sm:$0xff] }
 0x138   : > { %2221 = vmatpush.bf16.msrb.mxu2 %v3530_v38 }
 0x139   : > { %v1634_v3 = vpop.f32.mrf.mxu3 }
 0x13a   : > { %v1635_v12 = vadd.f32 %v1634_v3, %v534_v7 }
 0x13b   : > { %2194 = vmatpush.bf16.msrb.mxu3 %v3513_v46  ;;  %2208 = vmatpush.bf16.msrb.mxu1 %v3521_v0  ;;  %v3542_v46 = vld [vmem:[#allocation8 + $0xf8] sm:$0xff] }
 0x13c   : > { %v1649_v18 = vadd.f32 %v1648_v9, %v1635_v12  ;;  %2222 = vmatpush.bf16.msrb.mxu2 %v3529_v40  ;;  %2231 = vmatpush.bf16.msrb.mxu0 %v3542_v46 }
 0x13d   : > { %v1660_v5 = vpop.f32.mrf.mxu0 }
 0x13e   : > { %v1674_v10 = vpop.f32.mrf.mxu1  ;;  %v1661_v19 = vadd.f32 %v1660_v5, %v1647_v14 }
 0x13f   : > { %2195 = vmatpush.bf16.msrb.mxu3 %v3512_v52  ;;  %2209 = vmatpush.bf16.msrb.mxu1 %v3520_v1 }
 0x140   : > { %v1675_v23 = vadd.f32 %v1674_v10, %v1661_v19  ;;  %2223 = vmatpush.bf16.msrb.mxu2 %v3528_v37  ;;  %2232 = vmatpush.bf16.msrb.mxu0 %v3541_v48  ;;  %v3537_v10 = vld [vmem:[#allocation8 + $0xd0] sm:$0xff] }
 0x143   : > { %2196 = vmatpush.bf16.msrb.mxu3 %v3511_v58  ;;  %2210 = vmatpush.bf16.msrb.mxu1 %v3519_v4  ;;  %v3540_v58 = vld [vmem:[#allocation8 + $0xe8] sm:$0xff]  ;;  %v3538_v4 = vld [vmem:[#allocation8 + $0xd8] sm:$0xff] }
 0x144   : > { %2224 = vmatpush.bf16.msrb.mxu2 %v3527_v41  ;;  %2233 = vmatpush.bf16.msrb.mxu0 %v3540_v58 }
 0x145   : > { %v1688_v6 = vpop.f32.mrf.mxu3  ;;  %v1662_v15 = vpop.f32.mrf.mxu0 }
 0x146   : > { %2197 = vmatmul.bf16.vlgmr.msrb.gmra.mxu3 %v1925_v63  ;;  %v1663_v20 = vadd.f32 %v1662_v15, %v1649_v18  ;;  %v1676_v22 = vpop.f32.mrf.mxu1  ;;  %v1689_v25 = vadd.f32 %v1688_v6, %v1675_v23  ;;  %v536_v23 = vperm.slane %v4094_v16, 3 }
 0x148   : > { %v1677_v26 = vadd.f32 %v1676_v22, %v1663_v20  ;;  %2234 = vmatpush.bf16.msrb.mxu0 %v3539_v61  ;;  %v3535_v22 = vld [vmem:[#allocation8 + $0xc0] sm:$0xff] }
 0x149   : > { %v1702_v17 = vpop.f32.mrf.mxu2 }
 0x14a   : > { %v1703_v29 = vadd.f32 %v1702_v17, %v1689_v25  ;;  %v3536_v17 = vld [vmem:[#allocation8 + $0xc8] sm:$0xff] }
 0x14c   : > { %2235 = vmatpush.bf16.msrb.mxu0 %v3538_v4 }
 0x14d   : > { %v1690_v13 = vpop.f32.mrf.mxu3 }
 0x14e   : > { %v1691_v27 = vadd.f32 %v1690_v13, %v1677_v26 }
 0x150   : > { %2236 = vmatpush.bf16.msrb.mxu0 %v3537_v10 }
 0x151   : > { %v1704_v28 = vpop.f32.mrf.mxu2 }
 0x152   : > { %v1705_v31 = vadd.f32 %v1704_v28, %v1691_v27 }
 0x154   : > { %2237 = vmatpush.bf16.msrb.mxu0 %v3536_v17 }
 0x155   : > { %v1716_v24 = vpop.f32.mrf.mxu3 }
 0x156   : > { %v1717_v32 = vadd.f32 %v1716_v24, %v1703_v29 }
 0x158   : > { %v1918_v34 = vmax.f32 %v1717_v32, 0.0  ;;  %2238 = vmatpush.bf16.msrb.mxu0 %v3535_v22 }
 0x15d   : > { %v1718_v8 = vpop.f32.mrf.mxu3  ;;  %v1758_v39 = vpop.f32.mrf.mxu0 }
 0x15e   : > { %v1719_v33 = vadd.f32 %v1718_v8, %v1705_v31  ;;  %v1730_v60 = vpop.f32.mrf.mxu1 }
 0x15f   : > { %v1731_v47 = vadd.f32 %v1730_v60, %v535_v44 }
 0x160   : > { %v1922_v35 = vmax.f32 %v1719_v33, 0.0 }
 0x162   : > { %v1926_v36 = vpack.c.bf16 %v1922_v35, %v1918_v34 }
 0x164   : > { %2211 = vmatmul.bf16.vlgmr.msrb.gmra.mxu1 %v1926_v36 }
 0x165   : > { %v1760_v42 = vpop.f32.mrf.mxu0 }
 0x166   : > { %v1732_v45 = vpop.f32.mrf.mxu1 }
 0x167   : > { %v1733_v56 = vadd.f32 %v1732_v45, %v535_v44 }
 0x169   : > { %v1744_v43 = vpop.f32.mrf.mxu3 }
 0x16a   : > { %v1745_v53 = vadd.f32 %v1744_v43, %v1731_v47 }
 0x16b   : > { %v1772_v51 = vpop.f32.mrf.mxu2 }
 0x16c   : > { %v1759_v59 = vadd.f32 %v1758_v39, %v1745_v53 }
 0x16d   : > { %v1814_v49 = vpop.f32.mrf.mxu0 }
 0x16e   : > { %v1773_v63 = vadd.f32 %v1772_v51, %v1759_v59 }
 0x171   : > { %v1746_v52 = vpop.f32.mrf.mxu3 }
 0x172   : > { %v1747_v50 = vadd.f32 %v1746_v52, %v1733_v56 }
 0x173   : > { %v1774_v2 = vpop.f32.mrf.mxu2 }
 0x174   : > { %v1761_v0 = vadd.f32 %v1760_v42, %v1747_v50 }
 0x175   : > { %v1816_v1 = vpop.f32.mrf.mxu0 }
 0x176   : > { %v1775_v6 = vadd.f32 %v1774_v2, %v1761_v0 }
 0x17e   : > { %v1786_v57 = vpop.f32.mrf.mxu1 }
 0x17f   : > { %v1787_v3 = vadd.f32 %v1786_v57, %v1773_v63 }
 0x181   : > { %v1842_v15 = vpop.f32.mrf.mxu0 }
 0x186   : > { %v1788_v5 = vpop.f32.mrf.mxu1 }
 0x187   : > { %v1789_v9 = vadd.f32 %v1788_v5, %v1775_v6 }
 0x189   : > { %v1800_v62 = vpop.f32.mrf.mxu3  ;;  %v1844_v25 = vpop.f32.mrf.mxu0 }
 0x18a   : > { %v1801_v7 = vadd.f32 %v1800_v62, %v1787_v3 }
 0x18b   : > { %v1828_v18 = vpop.f32.mrf.mxu2 }
 0x18c   : > { %v1815_v12 = vadd.f32 %v1814_v49, %v1801_v7  ;;  %v1829_v24 = vadd.f32 %v1828_v18, %v536_v23  ;;  %v3625_v49 = vld [vmem:[%s4176_s4] ss:$0 sm:$0xff] }
 0x18e   : > { %v1919_v19 = vmax.f32 %v1815_v12, 0.0  ;;  %v1843_v27 = vadd.f32 %v1842_v15, %v1829_v24 }
 0x191   : > { %v1802_v11 = vpop.f32.mrf.mxu3 }
 0x192   : > { %v1803_v13 = vadd.f32 %v1802_v11, %v1789_v9 }
 0x193   : > { %v1830_v26 = vpop.f32.mrf.mxu2 }
 0x194   : > { %v1817_v14 = vadd.f32 %v1816_v1, %v1803_v13  ;;  %v1831_v31 = vadd.f32 %v1830_v26, %v536_v23 }
 0x196   : > { %v1923_v20 = vmax.f32 %v1817_v14, 0.0  ;;  %v1845_v33 = vadd.f32 %v1844_v25, %v1831_v31 }
 0x198   : > { %v1927_v21 = vpack.c.bf16 %v1923_v20, %v1919_v19 }
 0x19a   : > { %2225 = vmatmul.bf16.vlgmr.msrb.gmra.mxu2 %v1927_v21 }
 0x19e   : > { %v1856_v55 = vpop.f32.mrf.mxu1 }
 0x19f   : > { %v1857_v29 = vadd.f32 %v1856_v55, %v1843_v27 }
 0x1a1   : > { %v1898_v54 = vpop.f32.mrf.mxu0 }
 0x1a6   : > { %v1858_v28 = vpop.f32.mrf.mxu1 }
 0x1a7   : > { %v1859_v35 = vadd.f32 %v1858_v28, %v1845_v33 }
 0x1a9   : > { %v1870_v30 = vpop.f32.mrf.mxu3  ;;  %v1884_v32 = vpop.f32.mrf.mxu2 }
 0x1aa   : > { %v1871_v8 = vadd.f32 %v1870_v30, %v1857_v29  ;;  %v1900_v37 = vpop.f32.mrf.mxu0 }
 0x1ac   : > { %v1885_v34 = vadd.f32 %v1884_v32, %v1871_v8 }
 0x1ae   : > { %v1912_v36 = vpop.f32.mrf.mxu1  ;;  %v1899_v39 = vadd.f32 %v1898_v54, %v1885_v34 }
 0x1b0   : > { %v1913_v43 = vadd.f32 %v1912_v36, %v1899_v39 }
 0x1b1   : > { %v1872_v38 = vpop.f32.mrf.mxu3  ;;  %v1886_v40 = vpop.f32.mrf.mxu2 }
 0x1b2   : > { %v1873_v16 = vadd.f32 %v1872_v38, %v1859_v35  ;;  %v1920_v45 = vmax.f32 %v1913_v43, 0.0 }
 0x1b4   : > { %v1887_v60 = vadd.f32 %v1886_v40, %v1873_v16 }
 0x1b6   : > { %v1901_v41 = vadd.f32 %v1900_v37, %v1887_v60  ;;  %v1914_v42 = vpop.f32.mrf.mxu1 }
 0x1b8   : > { %v1915_v44 = vadd.f32 %v1914_v42, %v1901_v41 }
 0x1ba   : > { %v1924_v46 = vmax.f32 %v1915_v44, 0.0 }
 0x1bc   : > { %v1928_v47 = vpack.c.bf16 %v1924_v46, %v1920_v45 }
 0x1be   : > { %2239 = vmatmul.bf16.vlgmr.msrb.gmra.mxu0 %v1928_v47 }
 0x1c9   : > { %v2198_v48 = vpop.f32.mrf.mxu3 }
 0x1ca   : > { %v2199_v53 = vadd.f32 %v3625_v49, %v2198_v48 }
 0x1d1   : > { %v2200_v58 = vpop.f32.mrf.mxu3 }
 0x1d2   : > { %v2201_v62 = vadd.f32 %v3625_v49, %v2200_v58 }
 0x1e1   : > { %v2212_v51 = vpop.f32.mrf.mxu1 }
 0x1e2   : > { %v2213_v56 = vadd.f32 %v2212_v51, %v2199_v53 }
 0x1e9   : > { %v2214_v61 = vpop.f32.mrf.mxu1 }
 0x1ea   : > { %v2215_v0 = vadd.f32 %v2214_v61, %v2201_v62 }
 0x21d   : > { %v2226_v52 = vpop.f32.mrf.mxu2 }
 0x21e   : > { %v2227_v57 = vadd.f32 %v2226_v52, %v2213_v56 }
 0x225   : > { %v2228_v63 = vpop.f32.mrf.mxu2 }
 0x226   : > { %v2229_v1 = vadd.f32 %v2228_v63, %v2215_v0 }
 0x23b   : > { %v2240_v59 = vpop.f32.mrf.mxu0 }
 0x23c   : > { %v2241_v50 = vadd.f32 %v2240_v59, %v2227_v57 }
 0x23e   : > { %2245 = vst [vmem:[%s301_s28] sm:$0xff] %v2241_v50 }
 0x242   : > { %2254 = sbr.rel (!%p3937_p11) target bundleno = 614 (0x266), region = 60 }
 0x243   : > { %v2242_v2 = vpop.f32.mrf.mxu0 }
 0x244   : > { %v2243_v3 = vadd.f32 %v2242_v2, %v2229_v1 }
 0x246   : > { %2246 = vst [vmem:[%s301_s28 + $0x8] sm:$0xff] %v2243_v3 }
 0x247   : > { %s4207_s10 = smov (!%p2257_p6, %s2256_s10), 2 }
 0x248   : > { %s3308_s14 = sshll.u32 %s4207_s10, 3 }
 0x249   : > { %s2260_s15 = ssub.s32 16, %s3308_s14 }
 0x24a   : > { %s2261_s16 = sshll.u32 %s2260_s15, 4 }
 0x24b   : > { %2262 = vsyncadd %s2248_s8, %s2261_s16  ;;  %p4119_p7 = scmp.ne.s32.totalorder %s3308_s14, 0  ;;  %s3543_s30 = sshll.u32 %s3906_s22, 4 }
 0x24c   : > { %s2265_s17 = scalar_lea.hbm %s4177_s5, %s3543_s30  ;;  %s2267_s2 = sshll.u32 %s301_s28, 4  ;;  %s4127_s2 = int_to_ptr.vmem [resolvable:$true] %s2267_s2 }
 0x24d   : > { %s2269_s26 = sshll.u32 %s2265_s17, 4  ;;  %s3312_s11 = sshll.u32 %s4207_s10, 7  ;;  %s4129_s26 = int_to_ptr.hbm [resolvable:$true] %s2269_s26 }
 0x24e   : > { %s3755_s29 = sshra.s32 %s4127_s2, 4  ;;  %s3757_s7 = sshrl.u32 %s3312_s11, 4  ;;  %s3756_s29 = int_to_ptr.vmem [resolvable:$true] %s3755_s29 }
 0x24f   : > { %s3762_s1 = scalar_lea.vmem %s3756_s29, %s3757_s7  ;;  %s3852_s22 = smov [#allocation10]  }
 0x250   : > { %p3763_p11 = scmp.ne.s32.totalorder %s3756_s29, %s3762_s1  ;;  %s3766_s9 = scalar_lea.vmem %s3852_s22, 32 }
 0x251   : > { %p3768_p0 = scmp.lt.s32.totalorder %s3766_s9, %s3762_s1 }
 0x252   : > { %p3764_p10 = pnand %p3763_p11, %p4119_p7 }
 0x254   : > { %p3765_p1 = pneg %p3764_p10 }
 0x256   : > { %p3770_p3 = pnand %p3768_p0, %p3765_p1 }
 0x258   : > { %3773 = shalt.err (!%p3770_p3)
}
 0x259   : > { %s3774_s28 = sshra.s32 %s4129_s26, 4  ;;  %s3785_s30 = scalar_lea.hbm %s4177_s5, 24  ;;  %s3775_s28 = int_to_ptr.hbm [resolvable:$true] %s3774_s28 }
 0x25a   : > { %s3781_s14 = scalar_lea.hbm %s3775_s28, %s3757_s7  ;;  %p3786_p4 = scmp.lt.s32.totalorder %s3775_s28, %s4177_s5 }
 0x25b   : > { %p3782_p5 = scmp.ne.s32.totalorder %s3775_s28, %s3781_s14  ;;  %p3787_p12 = scmp.lt.s32.totalorder %s3785_s30, %s3781_s14 }
 0x25d   : > { %p3783_p8 = pnand %p3782_p5, %p4119_p7  ;;  %p3788_p13 = por %p3787_p12, %p3786_p4 }
 0x25f   : > { %p3784_p9 = pneg %p3783_p8 }
 0x261   : > { %p3789_p2 = pnand %p3788_p13, %p3784_p9 }
 0x263   : > { %3792 = shalt.err (!%p3789_p2)
}
 0x264   : > { %s3853_s17 = smov 128   ;;  %s3854_s29 = smov 8  }
 0x265   : > { %2275 = dma.vmem_to_hbm [thread:$0]  (%p4119_p7), %s4127_s2, %s3312_s11, %s4129_s26, %s2248_s8, %s3853_s17, %s3853_s17, %s3854_s29  }
 0x266 PF: > { %s2284_s7 = sand.u32 1, %s3828_s18   ;;  %p4196_p6 = scmp.ne.s32.totalorder %s4185_s6, 0 }
 0x267   : > { %p4197_p11 = scmp.ge.s32.totalorder %s3840_s21, 2  ;;  %s2285_s1 = scalar_lea.sflag [#allocation4], %s2284_s7 }
 0x269   : > { %p3572_p10 = pnand %p4197_p11, %p4196_p6 }
 0x26b   : > { %p3573_p1 = pneg %p3572_p10 }
 0x26d   : > { %3823 = dma.done.wait (%p3573_p1), %s2285_s1, 256  }
 0x26e   : > { %3825 = vsyncadd (%p3573_p1), %s2285_s1, 4294967040  ;;  %p20_p0 = scmp.ge.s32.totalorder %s3910_s24, 4   ;;  %s4198_s18 = smov %s3832_s19 }
 0x26f   : > { %s4199_s19 = smov %s3836_s20  ;;  %s4200_s20 = smov %s3922_s27 }
 0x270   : > { %s4201_s21 = smov %s3910_s24  ;;  %22 = sbr.rel (!%p20_p0) target bundleno = 10 (0xa), region = 97 }
 0x275   :  { %2291 = vsyncpa [#allocation3], 1 }
 0x276   :  { %2293 = vsyncpa [#allocation3 + $0x1], 1 }
 0x277   :  { %2294 = vsyncpa [#allocation6], 1 }
 0x278   :  { %2295 = vsyncpa [#allocation9], 1 }
 0x279   :  { %2296 = vsyncpa [#allocation4], 1 }
 0x27a   :  { %2298 = vsyncpa [#allocation4 + $0x1], 1 }

</bundles_post_ra>
